<compile_context>
chip_gen: v6e
topology: v6e:2x2x1
jax: 0.10.0
libtpu: 0.0.40
codegen_flags: <defaults>
</compile_context>

<pallas_src>
import functools
import math

import jax
import jax.numpy as jnp
from jax import lax
from jax.experimental import pallas as pl
from jax.experimental.pallas import tpu as pltpu


# ---------------------------------------------------------------------------
# Kernel
# ---------------------------------------------------------------------------
def topk_sae_kernel(x_ref, dec_b_ref, enc_wT_ref, enc_b_ref, dec_wT_ref,
                    out_ref, feat_ref, pre_ref, kth_ref,
                    *, k, m_valid, tm, strip, needs_row_mask):
    """One (TM, C) tile of the flattened (B*L, C) input.

    pre_ref : VMEM scratch (TM, D) f32 — encoder pre-activations.
    kth_ref : VMEM scratch (TM, 1) f32 — per-row k-th-largest value.
    """
    mm_dtype = enc_wT_ref.dtype                 # bf16 (default) or f32

    # ---- encoder: (TM, C) @ (C, D) on the MXU, f32 accumulate -------------
    xc = x_ref[...] - dec_b_ref[...]            # center by decoder_b (resident)
    pre_ref[...] = jnp.dot(xc.astype(mm_dtype), enc_wT_ref[...],
                           preferred_element_type=jnp.float32) + enc_b_ref[...]

    # ---- per-row top-k threshold, strip by strip ---------------------------
    # Each strip is `strip` rows (a sublane multiple); the k-1 strip-max
    # passes keep their working set in vregs instead of spilling a full
    # (TM, D) tensor on every pass.
    # NOTE: ties at the threshold can select != k features (torch.topk picks
    # exactly k); identical for continuous random inputs.
    # TODO(synk): for k >= ~32 replace the k-1 strip-max passes with a
    # value-domain bisection of the threshold (O(log range) compare+count
    # passes, independent of k).
    neg_inf = jnp.float32(-jnp.inf)

    def strip_body(s, carry):
        r0 = pl.multiple_of(s * strip, strip)
        w = pre_ref[pl.ds(r0, strip), :]        # (strip, D) f32

        def strip_max(_, w):
            m = jnp.max(w, axis=-1, keepdims=True)
            return jnp.where(w >= m, neg_inf, w)

        w = lax.fori_loop(0, k - 1, strip_max, w, unroll=True)
        kth_ref[pl.ds(r0, strip), :] = jnp.max(w, axis=-1, keepdims=True)
        return carry

    lax.fori_loop(0, tm // strip, strip_body, 0)

    # ---- streaming pass: mask + ReLU, feat counts, decoder input ----------
    pre = pre_ref[...]                          # (TM, D) f32
    sel = pre >= kth_ref[...]                   # (TM, D) bool
    h = jnp.where(sel, jnp.maximum(pre, 0.0), 0.0)

    def _unmasked_counts():
        return jnp.sum(sel.astype(jnp.int32), axis=0, keepdims=True)

    if needs_row_mask:
        # Padded rows exist only in the last tile — mask only there.
        last = pl.num_programs(0) - 1

        @pl.when(pl.program_id(0) == last)
        def _():
            row0 = pl.program_id(0) * tm
            rows = lax.broadcasted_iota(jnp.int32, (tm, 1), 0) + row0
            valid = rows < m_valid              # (TM, 1) bool
            feat_ref[0] = jnp.sum((sel & valid).astype(jnp.int32),
                                  axis=0, keepdims=True)

        @pl.when(pl.program_id(0) != last)
        def _():
            feat_ref[0] = _unmasked_counts()
    else:
        feat_ref[0] = _unmasked_counts()

    # ---- decoder: (TM, D) @ (D, C) + decoder_b -----------------------------
    rec = jnp.dot(h.astype(mm_dtype), dec_wT_ref[...],
                  preferred_element_type=jnp.float32)
    out_ref[...] = (rec + dec_b_ref[...]).astype(out_ref.dtype)


# ---------------------------------------------------------------------------
# Sizing helpers (per-generation)
# ---------------------------------------------------------------------------
def _device_kind():
    try:
        return jax.devices()[0].device_kind.lower()
    except Exception:
        return ""


def _default_tile_rows():
    """MXU-occupancy tile target: 128 rows on v5e (4x128^2 MXU, 1 vst slot),
    256 rows on v6e / v7x (2x256^2 MXU)."""
    kind = _device_kind()
    if "v5 lite" in kind or "v5e" in kind or "v5lite" in kind:
        return 128
    return 256


def _vmem_capacity_bytes():
    """Per-TensorCore VMEM capacity, best effort."""
    try:
        cap = getattr(pltpu.get_tpu_info(), "vmem_capacity_bytes", None)
        if cap:
            return int(cap)
    except Exception:
        pass
    kind = _device_kind()
    if "7" in kind:                 # v7x: 64 MiB per TensorCore
        return 64 << 20
    return 128 << 20                # v5e / v6e


def choose_tile_rows(M, L, target=None):
    """Pick the M-tile: multiple of 8 (sublane) and of L (so the decoder_b
    tile repeats cleanly), ~`target` rows for MXU occupancy, and split into
    >= 2 tiles whenever possible so the "parallel" grid axis can be spread
    across both v7x TensorCores (and pipelined on v5e/v6e)."""
    if target is None:
        target = _default_tile_rows()
    unit = (8 * L) // math.gcd(8, L)                     # lcm(8, L)
    m_ceil = ((M + unit - 1) // unit) * unit
    tm = max(unit, (target // unit) * unit)
    tm = min(tm, m_ceil)
    if m_ceil // tm < 2 and m_ceil >= 2 * unit:          # force >= 2 grid steps
        tm = max(unit, ((m_ceil // 2) // unit) * unit)
    return tm


def _estimate_vmem_bytes(tm, C, D, mm_dtype, out_dtype, weight_bufs):
    wb = jnp.dtype(mm_dtype).itemsize
    ob = jnp.dtype(out_dtype).itemsize
    total = 0
    total += 2 * tm * C * 4                  # x tiles (double-buffered, f32)
    total += 2 * tm * C * ob                 # reconstruction tiles
    total += 2 * 8 * D * 4                   # feat partial tiles (sublane-padded)
    total += weight_bufs * tm * C * 4        # decoder_b tile (resident)
    total += weight_bufs * C * D * wb        # encoder_w.T (resident)
    total += weight_bufs * 8 * D * 4         # encoder_b (sublane-padded)
    total += weight_bufs * D * C * wb        # decoder_w.T (resident)
    total += tm * D * 4                      # pre scratch
    total += tm * 128 * 4                    # kth scratch (lane-padded)
    return total


def _vmem_limit_bytes(need):
    cap = _vmem_capacity_bytes()
    limit = need + max(need // 4, 4 << 20)   # >= 25% / 4 MiB compiler headroom
    limit = max(limit, 32 << 20)             # don't go below the default scoped limit
    limit = min(limit, (cap * 7) // 8)       # leave headroom under physical VMEM
    return limit


# ---------------------------------------------------------------------------
# One-time parameter preparation (transpose / cast / decoder_b pre-tiling)
# ---------------------------------------------------------------------------
def prepare_topk_sae_params(decoder_b, encoder_w, encoder_b, decoder_w, *,
                            tile_rows, matmul_dtype=jnp.bfloat16):
    """Do the full-weight transpose + cast and decoder_b tiling once per
    training run, so the per-call path does not re-emit those HLOs."""
    L, C = decoder_b.shape[-2], decoder_b.shape[-1]
    D = encoder_w.shape[0]
    assert tile_rows % L == 0, "tile_rows must be a multiple of L"
    dec_b_tile = jnp.tile(decoder_b.reshape(L, C).astype(jnp.float32),
                          (tile_rows // L, 1))            # (TM, C)
    enc_wT = encoder_w.T.astype(matmul_dtype)             # (C, D)
    dec_wT = decoder_w.T.astype(matmul_dtype)             # (D, C)
    enc_b2 = encoder_b.reshape(1, D).astype(jnp.float32)  # (1, D)
    return dec_b_tile, enc_wT, enc_b2, dec_wT


# ---------------------------------------------------------------------------
# pallas_call construction + forward wrapper
# ---------------------------------------------------------------------------
def _build_pallas_call(kernel, *, n_tiles, tm, C, D, m_pad, out_dtype,
                       vmem_limit, single_buffer_weights):
    # Constant-index_map operands never change block index — single-buffer
    # them (halves resident-weight VMEM) when the installed jax supports it.
    const_kw = {"pipeline_mode": pl.Buffered(1)} if single_buffer_weights else {}
    # TODO(synk): if enc_wT + dec_wT exceed ~40 MiB (large SAEs on v7x's
    # 64 MiB VMEM), add a D-chunk grid axis marked "arbitrary": encoder writes
    # pre chunks to scratch, the threshold merges per-chunk candidates, and
    # the decoder accumulates over D chunks into an f32 VMEM accumulator.
    in_specs = [
        pl.BlockSpec((tm, C), lambda i: (i, 0)),                # x tile
        pl.BlockSpec((tm, C), lambda i: (0, 0), **const_kw),    # decoder_b tile
        pl.BlockSpec((C, D), lambda i: (0, 0), **const_kw),     # encoder_w.T
        pl.BlockSpec((1, D), lambda i: (0, 0), **const_kw),     # encoder_b
        pl.BlockSpec((D, C), lambda i: (0, 0), **const_kw),     # decoder_w.T
    ]
    out_specs = [
        pl.BlockSpec((tm, C), lambda i: (i, 0)),                # reconstruction
        pl.BlockSpec((1, 1, D), lambda i: (i, 0, 0)),           # feat partial
    ]
    return pl.pallas_call(
        kernel,
        out_shape=(
            jax.ShapeDtypeStruct((m_pad, C), out_dtype),
            jax.ShapeDtypeStruct((n_tiles, 1, D), jnp.int32),
        ),
        grid_spec=pltpu.PrefetchScalarGridSpec(
            num_scalar_prefetch=0,
            grid=(n_tiles,),
            in_specs=in_specs,
            out_specs=out_specs,
            scratch_shapes=[
                pltpu.VMEM((tm, D), jnp.float32),   # pre-activations
                pltpu.VMEM((tm, 1), jnp.float32),   # per-row k-th value
            ],
        ),
        compiler_params=pltpu.CompilerParams(
            # Tiles are fully independent (feat is per-tile) -> megacore-safe.
            dimension_semantics=("parallel",),
            vmem_limit_bytes=vmem_limit,
        ),
    )


def topk_sae_forward(x, decoder_b, encoder_w, encoder_b, decoder_w, k, *,
                     matmul_dtype=jnp.bfloat16, out_dtype=jnp.float32,
                     tile_rows=None, prepared=None):
    """Returns (reconstruction (B, L, C) in out_dtype, feature_act (D,) f32)."""
    B, L, C = x.shape
    D = encoder_w.shape[0]
    M = B * L

    tm = choose_tile_rows(M, L, tile_rows)
    n_tiles = pl.cdiv(M, tm)
    m_pad = n_tiles * tm
    strip = min(8, tm)                       # top-k working height (sublanes)
    assert tm % strip == 0

    # Flatten (B, L) into the matmul M dimension; pad to a tile multiple.
    # TODO(synk): padded rows still run the full top-k + decoder matmul
    # (wasted work only — feat is masked and out[:M] drops them).
    x_flat = x.reshape(M, C).astype(jnp.float32)
    if m_pad != M:
        x_flat = jnp.pad(x_flat, ((0, m_pad - M), (0, 0)))

    if prepared is None:
        prepared = prepare_topk_sae_params(decoder_b, encoder_w, encoder_b,
                                           decoder_w, tile_rows=tm,
                                           matmul_dtype=matmul_dtype)
    dec_b_tile, enc_wT, enc_b2, dec_wT = prepared
    assert dec_b_tile.shape == (tm, C), (
        "prepared params were built for a different tile size; use "
        "prepare_topk_sae_params(tile_rows=choose_tile_rows(B*L, L))")

    kernel = functools.partial(topk_sae_kernel, k=k, m_valid=M, tm=tm,
                               strip=strip, needs_row_mask=(m_pad != M))

    def run(single_buffer_weights):
        need = _estimate_vmem_bytes(
            tm, C, D, enc_wT.dtype, out_dtype,
            weight_bufs=1 if single_buffer_weights else 2)
        call = _build_pallas_call(
            kernel, n_tiles=n_tiles, tm=tm, C=C, D=D, m_pad=m_pad,
            out_dtype=out_dtype, vmem_limit=_vmem_limit_bytes(need),
            single_buffer_weights=single_buffer_weights)
        return call(x_flat, dec_b_tile, enc_wT, enc_b2, dec_wT)

    try:
        out, feat = run(single_buffer_weights=True)
    except Exception:
        # pipeline_mode=pl.Buffered(1) rejected by this jax build — fall back
        # to default double-buffered weight specs (correctness unaffected).
        out, feat = run(single_buffer_weights=False)

    rec = out[:M].reshape(B, L, C)
    feature_act = jnp.sum(feat, axis=(0, 1)).astype(jnp.float32)
    return rec, feature_act


# ---------------------------------------------------------------------------
# Plain-JAX reference + init helpers + demo
# ---------------------------------------------------------------------------
def ref_forward(x, decoder_b, encoder_w, encoder_b, decoder_w, k,
                matmul_dtype=jnp.float32):
    """Plain-JAX reference mirroring the PyTorch forward. `matmul_dtype` lets
    the reference apply the same matmul-input precision as the kernel's
    mixed-precision (bf16) path; f32 is the exact PyTorch path."""
    xc = x - decoder_b
    if matmul_dtype == jnp.float32:
        pre = jnp.einsum('blc,dc->bld', xc, encoder_w) + encoder_b
    else:
        pre = jnp.einsum('blc,dc->bld', xc.astype(matmul_dtype),
                         encoder_w.astype(matmul_dtype),
                         preferred_element_type=jnp.float32) + encoder_b
    _, idx = lax.top_k(pre, k)
    mask = jnp.sum(jax.nn.one_hot(idx, pre.shape[-1], dtype=jnp.float32), axis=-2)
    h = jnp.maximum(pre * mask, 0.0)
    if matmul_dtype == jnp.float32:
        rec = jnp.einsum('bld,cd->blc', h, decoder_w) + decoder_b
    else:
        rec = jnp.einsum('bld,cd->blc', h.astype(matmul_dtype),
                         decoder_w.astype(matmul_dtype),
                         preferred_element_type=jnp.float32) + decoder_b
    feat = jnp.sum((mask > 0).astype(jnp.float32), axis=(0, 1))
    return rec, feat


def kaiming_uniform(key, shape):
    # nn.init.kaiming_uniform_: bound = sqrt(6 / fan_in)
    fan_in = shape[1] if len(shape) == 2 else shape[1] * shape[2]
    bound = (6.0 / fan_in) ** 0.5
    return jax.random.uniform(key, shape, jnp.float32, -bound, bound)


if __name__ == "__main__":
    # Small shapes consistent with the module:
    #   dim = 128, hidden_features = 256, num_layers = 4  -> L = 8, k = 16
    B, num_layers, dim, hidden, k = 2, 4, 128, 256, 16
    L = num_layers * 2

    key = jax.random.PRNGKey(0)
    k0, k1, k2, k3 = jax.random.split(key, 4)

    decoder_b = kaiming_uniform(k0, (1, L, dim))
    encoder_w = kaiming_uniform(k1, (hidden, dim))
    encoder_b = jnp.zeros((hidden,), jnp.float32)
    decoder_w = kaiming_uniform(k2, (dim, hidden))
    x = jax.random.normal(k3, (B, L, dim), jnp.float32)

    # Same tile the forward will pick (>= 2 tiles even at this tiny M).
    tm = choose_tile_rows(B * L, L)

    # ---- exact-semantics check: f32 matmul path vs. plain-JAX reference ----
    prep32 = prepare_topk_sae_params(decoder_b, encoder_w, encoder_b,
                                     decoder_w, tile_rows=tm,
                                     matmul_dtype=jnp.float32)
    out32, feat32 = topk_sae_forward(x, decoder_b, encoder_w, encoder_b,
                                     decoder_w, k, matmul_dtype=jnp.float32,
                                     prepared=prep32)
    jax.block_until_ready(out32)
    jax.block_until_ready(feat32)
    ref_out, ref_feat = ref_forward(x, decoder_b, encoder_w, encoder_b,
                                    decoder_w, k)
    assert jnp.allclose(out32, ref_out, rtol=2e-3, atol=2e-3), \
        "reconstruction mismatch (f32 path)"
    assert jnp.allclose(feat32, ref_feat), "feature_act mismatch (f32 path)"

    # ---- production path: bf16 matmul inputs, f32 accumulate + top-k -------
    prep_bf = prepare_topk_sae_params(decoder_b, encoder_w, encoder_b,
                                      decoder_w, tile_rows=tm,
                                      matmul_dtype=jnp.bfloat16)
    out_bf, feat_bf = topk_sae_forward(x, decoder_b, encoder_w, encoder_b,
                                       decoder_w, k, prepared=prep_bf)
    jax.block_until_ready(out_bf)
    jax.block_until_ready(feat_bf)
    ref_out_bf, ref_feat_bf = ref_forward(x, decoder_b, encoder_w, encoder_b,
                                          decoder_w, k,
                                          matmul_dtype=jnp.bfloat16)
    assert jnp.allclose(out_bf, ref_out_bf, rtol=2e-3, atol=2e-3), \
        "reconstruction mismatch (bf16 path)"
    assert jnp.allclose(feat_bf, ref_feat_bf), "feature_act mismatch (bf16 path)"
    # Exact-count sanity check: holds for continuous random inputs (ties are
    # measure-zero); real data with repeated values could legitimately differ.
    assert float(jnp.sum(feat_bf)) == float(B * L * k), "top-k count mismatch"

    print("KERNEL_OK")
</pallas_src>

<mosaic_0001>
module attributes {stable_mosaic.version = 11 : i64} {
  func.func @topk_sae_kernel(%arg0: i32, %arg1: memref<8x128xf32, #tpu.memory_space<vmem>>, %arg2: memref<8x128xf32, #tpu.memory_space<vmem>>, %arg3: memref<128x256xf32, #tpu.memory_space<vmem>>, %arg4: memref<1x256xf32, #tpu.memory_space<vmem>>, %arg5: memref<256x128xf32, #tpu.memory_space<vmem>>, %arg6: memref<8x128xf32, #tpu.memory_space<vmem>>, %arg7: memref<1x1x256xi32, #tpu.memory_space<vmem>>, %arg8: memref<8x256xf32, #tpu.memory_space<vmem>>, %arg9: memref<8x1xf32, #tpu.memory_space<vmem>>) attributes {dimension_semantics = [#tpu.dimension_semantics<parallel>], iteration_bounds = array<i64: 2>, scalar_prefetch = 0 : i64, scratch_operands = 2 : i64, tpu.core_type = #tpu.core_type<tc>, window_params = [{transform_indices = @transform_0, window_bounds = array<i64: 8, 128>}, {pipeline_mode = #tpu.pipeline_mode<synchronous>, transform_indices = @transform_1, window_bounds = array<i64: 8, 128>}, {pipeline_mode = #tpu.pipeline_mode<synchronous>, transform_indices = @transform_2, window_bounds = array<i64: 128, 256>}, {pipeline_mode = #tpu.pipeline_mode<synchronous>, transform_indices = @transform_3, window_bounds = array<i64: 1, 256>}, {pipeline_mode = #tpu.pipeline_mode<synchronous>, transform_indices = @transform_4, window_bounds = array<i64: 256, 128>}, {transform_indices = @transform_5, window_bounds = array<i64: 8, 128>}, {transform_indices = @transform_6, window_bounds = array<i64: 1, 1, 256>}]} {
    %c0 = arith.constant 0 : index
    %c0_0 = arith.constant 0 : index
    %0 = vector.load %arg1[%c0, %c0_0] : memref<8x128xf32, #tpu.memory_space<vmem>>, vector<8x128xf32>
    %c0_1 = arith.constant 0 : index
    %c0_2 = arith.constant 0 : index
    %1 = vector.load %arg2[%c0_1, %c0_2] : memref<8x128xf32, #tpu.memory_space<vmem>>, vector<8x128xf32>
    %2 = arith.subf %0, %1 : vector<8x128xf32>
    %c0_3 = arith.constant 0 : index
    %c0_4 = arith.constant 0 : index
    %3 = vector.load %arg3[%c0_3, %c0_4] : memref<128x256xf32, #tpu.memory_space<vmem>>, vector<128x256xf32>
    %cst = arith.constant dense<0.000000e+00> : vector<8x256xf32>
    %4 = tpu.matmul %2, %3, %cst {dimension_numbers = #tpu.dot_dimension_numbers<[1], [0], [0], [1], [0, 0, 1, 1], [], []>} : vector<8x128xf32>, vector<128x256xf32>, vector<8x256xf32> -> vector<8x256xf32>
    %c0_5 = arith.constant 0 : index
    %c0_6 = arith.constant 0 : index
    %5 = vector.load %arg4[%c0_5, %c0_6] : memref<1x256xf32, #tpu.memory_space<vmem>>, vector<1x256xf32>
    %6 = vector.broadcast %5 : vector<1x256xf32> to vector<8x256xf32>
    %7 = arith.addf %4, %6 : vector<8x256xf32>
    %c0_7 = arith.constant 0 : index
    %c0_8 = arith.constant 0 : index
    %8 = vector.load %arg8[%c0_7, %c0_8] : memref<8x256xf32, #tpu.memory_space<vmem>>, vector<8x256xf32>
    tpu.vector_store %arg8[%c0_7, %c0_8], %7 {strides = array<i32>} : memref<8x256xf32, #tpu.memory_space<vmem>>, vector<8x256xf32>,
    %cst_9 = arith.constant 0xFF800000 : f32
    %c0_i32 = arith.constant 0 : i32
    %c8_i32 = arith.constant 8 : i32
    %9 = arith.muli %c0_i32, %c8_i32 : i32
    %10 = tpu.assume_multiple %9, 8 : i32
    %11 = arith.index_cast %10 : i32 to index
    %c0_10 = arith.constant 0 : index
    %12 = vector.load %arg8[%11, %c0_10] : memref<8x256xf32, #tpu.memory_space<vmem>>, vector<8x256xf32>
    %c0_i32_11 = arith.constant 0 : i32
    %cst_12 = arith.constant dense<0xFF800000> : vector<8xf32>
    %13 = vector.multi_reduction <maximumf>, %12, %cst_12 [1] : vector<8x256xf32> to vector<8xf32>
    %14 = vector.shape_cast %13 : vector<8xf32> to vector<8x1xf32>
    %15 = vector.broadcast %14 : vector<8x1xf32> to vector<8x256xf32>
    %16 = arith.cmpf oge, %12, %15 : vector<8x256xf32>
    %17 = vector.broadcast %cst_9 : f32 to vector<8x256xf32>
    %18 = arith.select %16, %17, %12 : vector<8x256xi1>, vector<8x256xf32>
    %c1_i32 = arith.constant 1 : i32
    %cst_13 = arith.constant dense<0xFF800000> : vector<8xf32>
    %19 = vector.multi_reduction <maximumf>, %18, %cst_13 [1] : vector<8x256xf32> to vector<8xf32>
    %20 = vector.shape_cast %19 : vector<8xf32> to vector<8x1xf32>
    %21 = vector.broadcast %20 : vector<8x1xf32> to vector<8x256xf32>
    %22 = arith.cmpf oge, %18, %21 : vector<8x256xf32>
    %23 = vector.broadcast %cst_9 : f32 to vector<8x256xf32>
    %24 = arith.select %22, %23, %18 : vector<8x256xi1>, vector<8x256xf32>
    %c2_i32 = arith.constant 2 : i32
    %cst_14 = arith.constant dense<0xFF800000> : vector<8xf32>
    %25 = vector.multi_reduction <maximumf>, %24, %cst_14 [1] : vector<8x256xf32> to vector<8xf32>
    %26 = vector.shape_cast %25 : vector<8xf32> to vector<8x1xf32>
    %27 = vector.broadcast %26 : vector<8x1xf32> to vector<8x256xf32>
    %28 = arith.cmpf oge, %24, %27 : vector<8x256xf32>
    %29 = vector.broadcast %cst_9 : f32 to vector<8x256xf32>
    %30 = arith.select %28, %29, %24 : vector<8x256xi1>, vector<8x256xf32>
    %c3_i32 = arith.constant 3 : i32
    %cst_15 = arith.constant dense<0xFF800000> : vector<8xf32>
    %31 = vector.multi_reduction <maximumf>, %30, %cst_15 [1] : vector<8x256xf32> to vector<8xf32>
    %32 = vector.shape_cast %31 : vector<8xf32> to vector<8x1xf32>
    %33 = vector.broadcast %32 : vector<8x1xf32> to vector<8x256xf32>
    %34 = arith.cmpf oge, %30, %33 : vector<8x256xf32>
    %35 = vector.broadcast %cst_9 : f32 to vector<8x256xf32>
    %36 = arith.select %34, %35, %30 : vector<8x256xi1>, vector<8x256xf32>
    %c4_i32 = arith.constant 4 : i32
    %cst_16 = arith.constant dense<0xFF800000> : vector<8xf32>
    %37 = vector.multi_reduction <maximumf>, %36, %cst_16 [1] : vector<8x256xf32> to vector<8xf32>
    %38 = vector.shape_cast %37 : vector<8xf32> to vector<8x1xf32>
    %39 = vector.broadcast %38 : vector<8x1xf32> to vector<8x256xf32>
    %40 = arith.cmpf oge, %36, %39 : vector<8x256xf32>
    %41 = vector.broadcast %cst_9 : f32 to vector<8x256xf32>
    %42 = arith.select %40, %41, %36 : vector<8x256xi1>, vector<8x256xf32>
    %c5_i32 = arith.constant 5 : i32
    %cst_17 = arith.constant dense<0xFF800000> : vector<8xf32>
    %43 = vector.multi_reduction <maximumf>, %42, %cst_17 [1] : vector<8x256xf32> to vector<8xf32>
    %44 = vector.shape_cast %43 : vector<8xf32> to vector<8x1xf32>
    %45 = vector.broadcast %44 : vector<8x1xf32> to vector<8x256xf32>
    %46 = arith.cmpf oge, %42, %45 : vector<8x256xf32>
    %47 = vector.broadcast %cst_9 : f32 to vector<8x256xf32>
    %48 = arith.select %46, %47, %42 : vector<8x256xi1>, vector<8x256xf32>
    %c6_i32 = arith.constant 6 : i32
    %cst_18 = arith.constant dense<0xFF800000> : vector<8xf32>
    %49 = vector.multi_reduction <maximumf>, %48, %cst_18 [1] : vector<8x256xf32> to vector<8xf32>
    %50 = vector.shape_cast %49 : vector<8xf32> to vector<8x1xf32>
    %51 = vector.broadcast %50 : vector<8x1xf32> to vector<8x256xf32>
    %52 = arith.cmpf oge, %48, %51 : vector<8x256xf32>
    %53 = vector.broadcast %cst_9 : f32 to vector<8x256xf32>
    %54 = arith.select %52, %53, %48 : vector<8x256xi1>, vector<8x256xf32>
    %c7_i32 = arith.constant 7 : i32
    %cst_19 = arith.constant dense<0xFF800000> : vector<8xf32>
    %55 = vector.multi_reduction <maximumf>, %54, %cst_19 [1] : vector<8x256xf32> to vector<8xf32>
    %56 = vector.shape_cast %55 : vector<8xf32> to vector<8x1xf32>
    %57 = vector.broadcast %56 : vector<8x1xf32> to vector<8x256xf32>
    %58 = arith.cmpf oge, %54, %57 : vector<8x256xf32>
    %59 = vector.broadcast %cst_9 : f32 to vector<8x256xf32>
    %60 = arith.select %58, %59, %54 : vector<8x256xi1>, vector<8x256xf32>
    %c8_i32_20 = arith.constant 8 : i32
    %cst_21 = arith.constant dense<0xFF800000> : vector<8xf32>
    %61 = vector.multi_reduction <maximumf>, %60, %cst_21 [1] : vector<8x256xf32> to vector<8xf32>
    %62 = vector.shape_cast %61 : vector<8xf32> to vector<8x1xf32>
    %63 = vector.broadcast %62 : vector<8x1xf32> to vector<8x256xf32>
    %64 = arith.cmpf oge, %60, %63 : vector<8x256xf32>
    %65 = vector.broadcast %cst_9 : f32 to vector<8x256xf32>
    %66 = arith.select %64, %65, %60 : vector<8x256xi1>, vector<8x256xf32>
    %c9_i32 = arith.constant 9 : i32
    %cst_22 = arith.constant dense<0xFF800000> : vector<8xf32>
    %67 = vector.multi_reduction <maximumf>, %66, %cst_22 [1] : vector<8x256xf32> to vector<8xf32>
    %68 = vector.shape_cast %67 : vector<8xf32> to vector<8x1xf32>
    %69 = vector.broadcast %68 : vector<8x1xf32> to vector<8x256xf32>
    %70 = arith.cmpf oge, %66, %69 : vector<8x256xf32>
    %71 = vector.broadcast %cst_9 : f32 to vector<8x256xf32>
    %72 = arith.select %70, %71, %66 : vector<8x256xi1>, vector<8x256xf32>
    %c10_i32 = arith.constant 10 : i32
    %cst_23 = arith.constant dense<0xFF800000> : vector<8xf32>
    %73 = vector.multi_reduction <maximumf>, %72, %cst_23 [1] : vector<8x256xf32> to vector<8xf32>
    %74 = vector.shape_cast %73 : vector<8xf32> to vector<8x1xf32>
    %75 = vector.broadcast %74 : vector<8x1xf32> to vector<8x256xf32>
    %76 = arith.cmpf oge, %72, %75 : vector<8x256xf32>
    %77 = vector.broadcast %cst_9 : f32 to vector<8x256xf32>
    %78 = arith.select %76, %77, %72 : vector<8x256xi1>, vector<8x256xf32>
    %c11_i32 = arith.constant 11 : i32
    %cst_24 = arith.constant dense<0xFF800000> : vector<8xf32>
    %79 = vector.multi_reduction <maximumf>, %78, %cst_24 [1] : vector<8x256xf32> to vector<8xf32>
    %80 = vector.shape_cast %79 : vector<8xf32> to vector<8x1xf32>
    %81 = vector.broadcast %80 : vector<8x1xf32> to vector<8x256xf32>
    %82 = arith.cmpf oge, %78, %81 : vector<8x256xf32>
    %83 = vector.broadcast %cst_9 : f32 to vector<8x256xf32>
    %84 = arith.select %82, %83, %78 : vector<8x256xi1>, vector<8x256xf32>
    %c12_i32 = arith.constant 12 : i32
    %cst_25 = arith.constant dense<0xFF800000> : vector<8xf32>
    %85 = vector.multi_reduction <maximumf>, %84, %cst_25 [1] : vector<8x256xf32> to vector<8xf32>
    %86 = vector.shape_cast %85 : vector<8xf32> to vector<8x1xf32>
    %87 = vector.broadcast %86 : vector<8x1xf32> to vector<8x256xf32>
    %88 = arith.cmpf oge, %84, %87 : vector<8x256xf32>
    %89 = vector.broadcast %cst_9 : f32 to vector<8x256xf32>
    %90 = arith.select %88, %89, %84 : vector<8x256xi1>, vector<8x256xf32>
    %c13_i32 = arith.constant 13 : i32
    %cst_26 = arith.constant dense<0xFF800000> : vector<8xf32>
    %91 = vector.multi_reduction <maximumf>, %90, %cst_26 [1] : vector<8x256xf32> to vector<8xf32>
    %92 = vector.shape_cast %91 : vector<8xf32> to vector<8x1xf32>
    %93 = vector.broadcast %92 : vector<8x1xf32> to vector<8x256xf32>
    %94 = arith.cmpf oge, %90, %93 : vector<8x256xf32>
    %95 = vector.broadcast %cst_9 : f32 to vector<8x256xf32>
    %96 = arith.select %94, %95, %90 : vector<8x256xi1>, vector<8x256xf32>
    %c14_i32 = arith.constant 14 : i32
    %cst_27 = arith.constant dense<0xFF800000> : vector<8xf32>
    %97 = vector.multi_reduction <maximumf>, %96, %cst_27 [1] : vector<8x256xf32> to vector<8xf32>
    %98 = vector.shape_cast %97 : vector<8xf32> to vector<8x1xf32>
    %99 = vector.broadcast %98 : vector<8x1xf32> to vector<8x256xf32>
    %100 = arith.cmpf oge, %96, %99 : vector<8x256xf32>
    %101 = vector.broadcast %cst_9 : f32 to vector<8x256xf32>
    %102 = arith.select %100, %101, %96 : vector<8x256xi1>, vector<8x256xf32>
    %cst_28 = arith.constant dense<0xFF800000> : vector<8xf32>
    %103 = vector.multi_reduction <maximumf>, %102, %cst_28 [1] : vector<8x256xf32> to vector<8xf32>
    %104 = vector.shape_cast %103 : vector<8xf32> to vector<8x1xf32>
    %105 = arith.index_cast %10 : i32 to index
    %c0_29 = arith.constant 0 : index
    %106 = vector.load %arg9[%105, %c0_29] : memref<8x1xf32, #tpu.memory_space<vmem>>, vector<8x1xf32>
    tpu.vector_store %arg9[%105, %c0_29], %104 {strides = array<i32>} : memref<8x1xf32, #tpu.memory_space<vmem>>, vector<8x1xf32>,
    %c1_i32_30 = arith.constant 1 : i32
    %c0_31 = arith.constant 0 : index
    %c0_32 = arith.constant 0 : index
    %107 = vector.load %arg8[%c0_31, %c0_32] : memref<8x256xf32, #tpu.memory_space<vmem>>, vector<8x256xf32>
    %c0_33 = arith.constant 0 : index
    %c0_34 = arith.constant 0 : index
    %108 = vector.load %arg9[%c0_33, %c0_34] : memref<8x1xf32, #tpu.memory_space<vmem>>, vector<8x1xf32>
    %109 = vector.broadcast %108 : vector<8x1xf32> to vector<8x256xf32>
    %110 = arith.cmpf oge, %107, %109 : vector<8x256xf32>
    %cst_35 = arith.constant 0.000000e+00 : f32
    %111 = vector.broadcast %cst_35 : f32 to vector<8x256xf32>
    %112 = arith.maximumf %107, %111 : vector<8x256xf32>
    %cst_36 = arith.constant 0.000000e+00 : f32
    %113 = vector.broadcast %cst_36 : f32 to vector<8x256xf32>
    %114 = arith.select %110, %112, %113 : vector<8x256xi1>, vector<8x256xf32>
    %115 = arith.extui %110 : vector<8x256xi1> to vector<8x256xi32>
    %cst_37 = arith.constant dense<0> : vector<256xi32>
    %116 = vector.multi_reduction <add>, %115, %cst_37 [0] : vector<8x256xi32> to vector<256xi32>
    %117 = vector.shape_cast %116 : vector<256xi32> to vector<1x256xi32>
    %c0_38 = arith.constant 0 : index
    %c0_39 = arith.constant 0 : index
    %c0_40 = arith.constant 0 : index
    %118 = vector.load %arg7[%c0_38, %c0_39, %c0_40] : memref<1x1x256xi32, #tpu.memory_space<vmem>>, vector<1x1x256xi32>
    %119 = vector.shape_cast %118 : vector<1x1x256xi32> to vector<1x256xi32>
    %120 = vector.shape_cast %117 : vector<1x256xi32> to vector<1x1x256xi32>
    tpu.vector_store %arg7[%c0_38, %c0_39, %c0_40], %120 {strides = array<i32>} : memref<1x1x256xi32, #tpu.memory_space<vmem>>, vector<1x1x256xi32>,
    %c0_41 = arith.constant 0 : index
    %c0_42 = arith.constant 0 : index
    %121 = vector.load %arg5[%c0_41, %c0_42] : memref<256x128xf32, #tpu.memory_space<vmem>>, vector<256x128xf32>
    %cst_43 = arith.constant dense<0.000000e+00> : vector<8x128xf32>
    %122 = tpu.matmul %114, %121, %cst_43 {dimension_numbers = #tpu.dot_dimension_numbers<[1], [0], [0], [1], [0, 0, 1, 1], [], []>} : vector<8x256xf32>, vector<256x128xf32>, vector<8x128xf32> -> vector<8x128xf32>
    %c0_44 = arith.constant 0 : index
    %c0_45 = arith.constant 0 : index
    %123 = vector.load %arg2[%c0_44, %c0_45] : memref<8x128xf32, #tpu.memory_space<vmem>>, vector<8x128xf32>
    %124 = arith.addf %122, %123 : vector<8x128xf32>
    %c0_46 = arith.constant 0 : index
    %c0_47 = arith.constant 0 : index
    %125 = vector.load %arg6[%c0_46, %c0_47] : memref<8x128xf32, #tpu.memory_space<vmem>>, vector<8x128xf32>
    tpu.vector_store %arg6[%c0_46, %c0_47], %124 {strides = array<i32>} : memref<8x128xf32, #tpu.memory_space<vmem>>, vector<8x128xf32>,
    return
  }
  func.func @transform_0(%arg0: i32) -> (i32, i32) {
    %c0_i32 = arith.constant 0 : i32
    %c0_i32_0 = arith.constant 0 : i32
    return %arg0, %c0_i32 : i32, i32
  }
  func.func @transform_1(%arg0: i32) -> (i32, i32) {
    %c0_i32 = arith.constant 0 : i32
    %c0_i32_0 = arith.constant 0 : i32
    %c0_i32_1 = arith.constant 0 : i32
    return %c0_i32, %c0_i32_0 : i32, i32
  }
  func.func @transform_2(%arg0: i32) -> (i32, i32) {
    %c0_i32 = arith.constant 0 : i32
    %c0_i32_0 = arith.constant 0 : i32
    %c0_i32_1 = arith.constant 0 : i32
    return %c0_i32, %c0_i32_0 : i32, i32
  }
  func.func @transform_3(%arg0: i32) -> (i32, i32) {
    %c0_i32 = arith.constant 0 : i32
    %c0_i32_0 = arith.constant 0 : i32
    %c0_i32_1 = arith.constant 0 : i32
    return %c0_i32, %c0_i32_0 : i32, i32
  }
  func.func @transform_4(%arg0: i32) -> (i32, i32) {
    %c0_i32 = arith.constant 0 : i32
    %c0_i32_0 = arith.constant 0 : i32
    %c0_i32_1 = arith.constant 0 : i32
    return %c0_i32, %c0_i32_0 : i32, i32
  }
  func.func @transform_5(%arg0: i32) -> (i32, i32) {
    %c0_i32 = arith.constant 0 : i32
    %c0_i32_0 = arith.constant 0 : i32
    return %arg0, %c0_i32 : i32, i32
  }
  func.func @transform_6(%arg0: i32) -> (i32, i32, i32) {
    %c0_i32 = arith.constant 0 : i32
    %c0_i32_0 = arith.constant 0 : i32
    %c0_i32_1 = arith.constant 0 : i32
    return %arg0, %c0_i32, %c0_i32_0 : i32, i32, i32
  }
}

module attributes {stable_mosaic.version = 11 : i64} {
  func.func @topk_sae_kernel(%arg0: i32, %arg1: memref<8x128xf32, #tpu.memory_space<vmem>>, %arg2: memref<8x128xf32, #tpu.memory_space<vmem>>, %arg3: memref<128x256xf32, #tpu.memory_space<vmem>>, %arg4: memref<1x256xf32, #tpu.memory_space<vmem>>, %arg5: memref<256x128xf32, #tpu.memory_space<vmem>>, %arg6: memref<8x128xf32, #tpu.memory_space<vmem>>, %arg7: memref<1x1x256xi32, #tpu.memory_space<vmem>>, %arg8: memref<8x256xf32, #tpu.memory_space<vmem>>, %arg9: memref<8x1xf32, #tpu.memory_space<vmem>>) attributes {dimension_semantics = [#tpu.dimension_semantics<parallel>], iteration_bounds = array<i64: 2>, scalar_prefetch = 0 : i64, scratch_operands = 2 : i64, tpu.core_type = #tpu.core_type<tc>, window_params = [{transform_indices = @transform_0, window_bounds = array<i64: 8, 128>}, {pipeline_mode = #tpu.pipeline_mode<synchronous>, transform_indices = @transform_1, window_bounds = array<i64: 8, 128>}, {pipeline_mode = #tpu.pipeline_mode<synchronous>, transform_indices = @transform_2, window_bounds = array<i64: 128, 256>}, {pipeline_mode = #tpu.pipeline_mode<synchronous>, transform_indices = @transform_3, window_bounds = array<i64: 1, 256>}, {pipeline_mode = #tpu.pipeline_mode<synchronous>, transform_indices = @transform_4, window_bounds = array<i64: 256, 128>}, {transform_indices = @transform_5, window_bounds = array<i64: 8, 128>}, {transform_indices = @transform_6, window_bounds = array<i64: 1, 1, 256>}]} {
    %c0 = arith.constant 0 : index
    %c0_0 = arith.constant 0 : index
    %0 = vector.load %arg1[%c0, %c0_0] : memref<8x128xf32, #tpu.memory_space<vmem>>, vector<8x128xf32>
    %c0_1 = arith.constant 0 : index
    %c0_2 = arith.constant 0 : index
    %1 = vector.load %arg2[%c0_1, %c0_2] : memref<8x128xf32, #tpu.memory_space<vmem>>, vector<8x128xf32>
    %2 = arith.subf %0, %1 : vector<8x128xf32>
    %c0_3 = arith.constant 0 : index
    %c0_4 = arith.constant 0 : index
    %3 = vector.load %arg3[%c0_3, %c0_4] : memref<128x256xf32, #tpu.memory_space<vmem>>, vector<128x256xf32>
    %cst = arith.constant dense<0.000000e+00> : vector<8x256xf32>
    %4 = tpu.matmul %2, %3, %cst {dimension_numbers = #tpu.dot_dimension_numbers<[1], [0], [0], [1], [0, 0, 1, 1], [], []>} : vector<8x128xf32>, vector<128x256xf32>, vector<8x256xf32> -> vector<8x256xf32>
    %c0_5 = arith.constant 0 : index
    %c0_6 = arith.constant 0 : index
    %5 = vector.load %arg4[%c0_5, %c0_6] : memref<1x256xf32, #tpu.memory_space<vmem>>, vector<1x256xf32>
    %6 = vector.broadcast %5 : vector<1x256xf32> to vector<8x256xf32>
    %7 = arith.addf %4, %6 : vector<8x256xf32>
    %c0_7 = arith.constant 0 : index
    %c0_8 = arith.constant 0 : index
    %8 = vector.load %arg8[%c0_7, %c0_8] : memref<8x256xf32, #tpu.memory_space<vmem>>, vector<8x256xf32>
    tpu.vector_store %arg8[%c0_7, %c0_8], %7 {strides = array<i32>} : memref<8x256xf32, #tpu.memory_space<vmem>>, vector<8x256xf32>,
    %cst_9 = arith.constant 0xFF800000 : f32
    %c0_i32 = arith.constant 0 : i32
    %c8_i32 = arith.constant 8 : i32
    %9 = arith.muli %c0_i32, %c8_i32 : i32
    %10 = tpu.assume_multiple %9, 8 : i32
    %11 = arith.index_cast %10 : i32 to index
    %c0_10 = arith.constant 0 : index
    %12 = vector.load %arg8[%11, %c0_10] : memref<8x256xf32, #tpu.memory_space<vmem>>, vector<8x256xf32>
    %c0_i32_11 = arith.constant 0 : i32
    %cst_12 = arith.constant dense<0xFF800000> : vector<8xf32>
    %13 = vector.multi_reduction <maximumf>, %12, %cst_12 [1] : vector<8x256xf32> to vector<8xf32>
    %14 = vector.shape_cast %13 : vector<8xf32> to vector<8x1xf32>
    %15 = vector.broadcast %14 : vector<8x1xf32> to vector<8x256xf32>
    %16 = arith.cmpf oge, %12, %15 : vector<8x256xf32>
    %17 = vector.broadcast %cst_9 : f32 to vector<8x256xf32>
    %18 = arith.select %16, %17, %12 : vector<8x256xi1>, vector<8x256xf32>
    %c1_i32 = arith.constant 1 : i32
    %cst_13 = arith.constant dense<0xFF800000> : vector<8xf32>
    %19 = vector.multi_reduction <maximumf>, %18, %cst_13 [1] : vector<8x256xf32> to vector<8xf32>
    %20 = vector.shape_cast %19 : vector<8xf32> to vector<8x1xf32>
    %21 = vector.broadcast %20 : vector<8x1xf32> to vector<8x256xf32>
    %22 = arith.cmpf oge, %18, %21 : vector<8x256xf32>
    %23 = vector.broadcast %cst_9 : f32 to vector<8x256xf32>
    %24 = arith.select %22, %23, %18 : vector<8x256xi1>, vector<8x256xf32>
    %c2_i32 = arith.constant 2 : i32
    %cst_14 = arith.constant dense<0xFF800000> : vector<8xf32>
    %25 = vector.multi_reduction <maximumf>, %24, %cst_14 [1] : vector<8x256xf32> to vector<8xf32>
    %26 = vector.shape_cast %25 : vector<8xf32> to vector<8x1xf32>
    %27 = vector.broadcast %26 : vector<8x1xf32> to vector<8x256xf32>
    %28 = arith.cmpf oge, %24, %27 : vector<8x256xf32>
    %29 = vector.broadcast %cst_9 : f32 to vector<8x256xf32>
    %30 = arith.select %28, %29, %24 : vector<8x256xi1>, vector<8x256xf32>
    %c3_i32 = arith.constant 3 : i32
    %cst_15 = arith.constant dense<0xFF800000> : vector<8xf32>
    %31 = vector.multi_reduction <maximumf>, %30, %cst_15 [1] : vector<8x256xf32> to vector<8xf32>
    %32 = vector.shape_cast %31 : vector<8xf32> to vector<8x1xf32>
    %33 = vector.broadcast %32 : vector<8x1xf32> to vector<8x256xf32>
    %34 = arith.cmpf oge, %30, %33 : vector<8x256xf32>
    %35 = vector.broadcast %cst_9 : f32 to vector<8x256xf32>
    %36 = arith.select %34, %35, %30 : vector<8x256xi1>, vector<8x256xf32>
    %c4_i32 = arith.constant 4 : i32
    %cst_16 = arith.constant dense<0xFF800000> : vector<8xf32>
    %37 = vector.multi_reduction <maximumf>, %36, %cst_16 [1] : vector<8x256xf32> to vector<8xf32>
    %38 = vector.shape_cast %37 : vector<8xf32> to vector<8x1xf32>
    %39 = vector.broadcast %38 : vector<8x1xf32> to vector<8x256xf32>
    %40 = arith.cmpf oge, %36, %39 : vector<8x256xf32>
    %41 = vector.broadcast %cst_9 : f32 to vector<8x256xf32>
    %42 = arith.select %40, %41, %36 : vector<8x256xi1>, vector<8x256xf32>
    %c5_i32 = arith.constant 5 : i32
    %cst_17 = arith.constant dense<0xFF800000> : vector<8xf32>
    %43 = vector.multi_reduction <maximumf>, %42, %cst_17 [1] : vector<8x256xf32> to vector<8xf32>
    %44 = vector.shape_cast %43 : vector<8xf32> to vector<8x1xf32>
    %45 = vector.broadcast %44 : vector<8x1xf32> to vector<8x256xf32>
    %46 = arith.cmpf oge, %42, %45 : vector<8x256xf32>
    %47 = vector.broadcast %cst_9 : f32 to vector<8x256xf32>
    %48 = arith.select %46, %47, %42 : vector<8x256xi1>, vector<8x256xf32>
    %c6_i32 = arith.constant 6 : i32
    %cst_18 = arith.constant dense<0xFF800000> : vector<8xf32>
    %49 = vector.multi_reduction <maximumf>, %48, %cst_18 [1] : vector<8x256xf32> to vector<8xf32>
    %50 = vector.shape_cast %49 : vector<8xf32> to vector<8x1xf32>
    %51 = vector.broadcast %50 : vector<8x1xf32> to vector<8x256xf32>
    %52 = arith.cmpf oge, %48, %51 : vector<8x256xf32>
    %53 = vector.broadcast %cst_9 : f32 to vector<8x256xf32>
    %54 = arith.select %52, %53, %48 : vector<8x256xi1>, vector<8x256xf32>
    %c7_i32 = arith.constant 7 : i32
    %cst_19 = arith.constant dense<0xFF800000> : vector<8xf32>
    %55 = vector.multi_reduction <maximumf>, %54, %cst_19 [1] : vector<8x256xf32> to vector<8xf32>
    %56 = vector.shape_cast %55 : vector<8xf32> to vector<8x1xf32>
    %57 = vector.broadcast %56 : vector<8x1xf32> to vector<8x256xf32>
    %58 = arith.cmpf oge, %54, %57 : vector<8x256xf32>
    %59 = vector.broadcast %cst_9 : f32 to vector<8x256xf32>
    %60 = arith.select %58, %59, %54 : vector<8x256xi1>, vector<8x256xf32>
    %c8_i32_20 = arith.constant 8 : i32
    %cst_21 = arith.constant dense<0xFF800000> : vector<8xf32>
    %61 = vector.multi_reduction <maximumf>, %60, %cst_21 [1] : vector<8x256xf32> to vector<8xf32>
    %62 = vector.shape_cast %61 : vector<8xf32> to vector<8x1xf32>
    %63 = vector.broadcast %62 : vector<8x1xf32> to vector<8x256xf32>
    %64 = arith.cmpf oge, %60, %63 : vector<8x256xf32>
    %65 = vector.broadcast %cst_9 : f32 to vector<8x256xf32>
    %66 = arith.select %64, %65, %60 : vector<8x256xi1>, vector<8x256xf32>
    %c9_i32 = arith.constant 9 : i32
    %cst_22 = arith.constant dense<0xFF800000> : vector<8xf32>
    %67 = vector.multi_reduction <maximumf>, %66, %cst_22 [1] : vector<8x256xf32> to vector<8xf32>
    %68 = vector.shape_cast %67 : vector<8xf32> to vector<8x1xf32>
    %69 = vector.broadcast %68 : vector<8x1xf32> to vector<8x256xf32>
    %70 = arith.cmpf oge, %66, %69 : vector<8x256xf32>
    %71 = vector.broadcast %cst_9 : f32 to vector<8x256xf32>
    %72 = arith.select %70, %71, %66 : vector<8x256xi1>, vector<8x256xf32>
    %c10_i32 = arith.constant 10 : i32
    %cst_23 = arith.constant dense<0xFF800000> : vector<8xf32>
    %73 = vector.multi_reduction <maximumf>, %72, %cst_23 [1] : vector<8x256xf32> to vector<8xf32>
    %74 = vector.shape_cast %73 : vector<8xf32> to vector<8x1xf32>
    %75 = vector.broadcast %74 : vector<8x1xf32> to vector<8x256xf32>
    %76 = arith.cmpf oge, %72, %75 : vector<8x256xf32>
    %77 = vector.broadcast %cst_9 : f32 to vector<8x256xf32>
    %78 = arith.select %76, %77, %72 : vector<8x256xi1>, vector<8x256xf32>
    %c11_i32 = arith.constant 11 : i32
    %cst_24 = arith.constant dense<0xFF800000> : vector<8xf32>
    %79 = vector.multi_reduction <maximumf>, %78, %cst_24 [1] : vector<8x256xf32> to vector<8xf32>
    %80 = vector.shape_cast %79 : vector<8xf32> to vector<8x1xf32>
    %81 = vector.broadcast %80 : vector<8x1xf32> to vector<8x256xf32>
    %82 = arith.cmpf oge, %78, %81 : vector<8x256xf32>
    %83 = vector.broadcast %cst_9 : f32 to vector<8x256xf32>
    %84 = arith.select %82, %83, %78 : vector<8x256xi1>, vector<8x256xf32>
    %c12_i32 = arith.constant 12 : i32
    %cst_25 = arith.constant dense<0xFF800000> : vector<8xf32>
    %85 = vector.multi_reduction <maximumf>, %84, %cst_25 [1] : vector<8x256xf32> to vector<8xf32>
    %86 = vector.shape_cast %85 : vector<8xf32> to vector<8x1xf32>
    %87 = vector.broadcast %86 : vector<8x1xf32> to vector<8x256xf32>
    %88 = arith.cmpf oge, %84, %87 : vector<8x256xf32>
    %89 = vector.broadcast %cst_9 : f32 to vector<8x256xf32>
    %90 = arith.select %88, %89, %84 : vector<8x256xi1>, vector<8x256xf32>
    %c13_i32 = arith.constant 13 : i32
    %cst_26 = arith.constant dense<0xFF800000> : vector<8xf32>
    %91 = vector.multi_reduction <maximumf>, %90, %cst_26 [1] : vector<8x256xf32> to vector<8xf32>
    %92 = vector.shape_cast %91 : vector<8xf32> to vector<8x1xf32>
    %93 = vector.broadcast %92 : vector<8x1xf32> to vector<8x256xf32>
    %94 = arith.cmpf oge, %90, %93 : vector<8x256xf32>
    %95 = vector.broadcast %cst_9 : f32 to vector<8x256xf32>
    %96 = arith.select %94, %95, %90 : vector<8x256xi1>, vector<8x256xf32>
    %c14_i32 = arith.constant 14 : i32
    %cst_27 = arith.constant dense<0xFF800000> : vector<8xf32>
    %97 = vector.multi_reduction <maximumf>, %96, %cst_27 [1] : vector<8x256xf32> to vector<8xf32>
    %98 = vector.shape_cast %97 : vector<8xf32> to vector<8x1xf32>
    %99 = vector.broadcast %98 : vector<8x1xf32> to vector<8x256xf32>
    %100 = arith.cmpf oge, %96, %99 : vector<8x256xf32>
    %101 = vector.broadcast %cst_9 : f32 to vector<8x256xf32>
    %102 = arith.select %100, %101, %96 : vector<8x256xi1>, vector<8x256xf32>
    %cst_28 = arith.constant dense<0xFF800000> : vector<8xf32>
    %103 = vector.multi_reduction <maximumf>, %102, %cst_28 [1] : vector<8x256xf32> to vector<8xf32>
    %104 = vector.shape_cast %103 : vector<8xf32> to vector<8x1xf32>
    %105 = arith.index_cast %10 : i32 to index
    %c0_29 = arith.constant 0 : index
    %106 = vector.load %arg9[%105, %c0_29] : memref<8x1xf32, #tpu.memory_space<vmem>>, vector<8x1xf32>
    tpu.vector_store %arg9[%105, %c0_29], %104 {strides = array<i32>} : memref<8x1xf32, #tpu.memory_space<vmem>>, vector<8x1xf32>,
    %c1_i32_30 = arith.constant 1 : i32
    %c0_31 = arith.constant 0 : index
    %c0_32 = arith.constant 0 : index
    %107 = vector.load %arg8[%c0_31, %c0_32] : memref<8x256xf32, #tpu.memory_space<vmem>>, vector<8x256xf32>
    %c0_33 = arith.constant 0 : index
    %c0_34 = arith.constant 0 : index
    %108 = vector.load %arg9[%c0_33, %c0_34] : memref<8x1xf32, #tpu.memory_space<vmem>>, vector<8x1xf32>
    %109 = vector.broadcast %108 : vector<8x1xf32> to vector<8x256xf32>
    %110 = arith.cmpf oge, %107, %109 : vector<8x256xf32>
    %cst_35 = arith.constant 0.000000e+00 : f32
    %111 = vector.broadcast %cst_35 : f32 to vector<8x256xf32>
    %112 = arith.maximumf %107, %111 : vector<8x256xf32>
    %cst_36 = arith.constant 0.000000e+00 : f32
    %113 = vector.broadcast %cst_36 : f32 to vector<8x256xf32>
    %114 = arith.select %110, %112, %113 : vector<8x256xi1>, vector<8x256xf32>
    %115 = arith.extui %110 : vector<8x256xi1> to vector<8x256xi32>
    %cst_37 = arith.constant dense<0> : vector<256xi32>
    %116 = vector.multi_reduction <add>, %115, %cst_37 [0] : vector<8x256xi32> to vector<256xi32>
    %117 = vector.shape_cast %116 : vector<256xi32> to vector<1x256xi32>
    %c0_38 = arith.constant 0 : index
    %c0_39 = arith.constant 0 : index
    %c0_40 = arith.constant 0 : index
    %118 = vector.load %arg7[%c0_38, %c0_39, %c0_40] : memref<1x1x256xi32, #tpu.memory_space<vmem>>, vector<1x1x256xi32>
    %119 = vector.shape_cast %118 : vector<1x1x256xi32> to vector<1x256xi32>
    %120 = vector.shape_cast %117 : vector<1x256xi32> to vector<1x1x256xi32>
    tpu.vector_store %arg7[%c0_38, %c0_39, %c0_40], %120 {strides = array<i32>} : memref<1x1x256xi32, #tpu.memory_space<vmem>>, vector<1x1x256xi32>,
    %c0_41 = arith.constant 0 : index
    %c0_42 = arith.constant 0 : index
    %121 = vector.load %arg5[%c0_41, %c0_42] : memref<256x128xf32, #tpu.memory_space<vmem>>, vector<256x128xf32>
    %cst_43 = arith.constant dense<0.000000e+00> : vector<8x128xf32>
    %122 = tpu.matmul %114, %121, %cst_43 {dimension_numbers = #tpu.dot_dimension_numbers<[1], [0], [0], [1], [0, 0, 1, 1], [], []>} : vector<8x256xf32>, vector<256x128xf32>, vector<8x128xf32> -> vector<8x128xf32>
    %c0_44 = arith.constant 0 : index
    %c0_45 = arith.constant 0 : index
    %123 = vector.load %arg2[%c0_44, %c0_45] : memref<8x128xf32, #tpu.memory_space<vmem>>, vector<8x128xf32>
    %124 = arith.addf %122, %123 : vector<8x128xf32>
    %c0_46 = arith.constant 0 : index
    %c0_47 = arith.constant 0 : index
    %125 = vector.load %arg6[%c0_46, %c0_47] : memref<8x128xf32, #tpu.memory_space<vmem>>, vector<8x128xf32>
    tpu.vector_store %arg6[%c0_46, %c0_47], %124 {strides = array<i32>} : memref<8x128xf32, #tpu.memory_space<vmem>>, vector<8x128xf32>,
    return
  }
  func.func @transform_0(%arg0: i32) -> (i32, i32) {
    %c0_i32 = arith.constant 0 : i32
    %c0_i32_0 = arith.constant 0 : i32
    return %arg0, %c0_i32 : i32, i32
  }
  func.func @transform_1(%arg0: i32) -> (i32, i32) {
    %c0_i32 = arith.constant 0 : i32
    %c0_i32_0 = arith.constant 0 : i32
    %c0_i32_1 = arith.constant 0 : i32
    return %c0_i32, %c0_i32_0 : i32, i32
  }
  func.func @transform_2(%arg0: i32) -> (i32, i32) {
    %c0_i32 = arith.constant 0 : i32
    %c0_i32_0 = arith.constant 0 : i32
    %c0_i32_1 = arith.constant 0 : i32
    return %c0_i32, %c0_i32_0 : i32, i32
  }
  func.func @transform_3(%arg0: i32) -> (i32, i32) {
    %c0_i32 = arith.constant 0 : i32
    %c0_i32_0 = arith.constant 0 : i32
    %c0_i32_1 = arith.constant 0 : i32
    return %c0_i32, %c0_i32_0 : i32, i32
  }
  func.func @transform_4(%arg0: i32) -> (i32, i32) {
    %c0_i32 = arith.constant 0 : i32
    %c0_i32_0 = arith.constant 0 : i32
    %c0_i32_1 = arith.constant 0 : i32
    return %c0_i32, %c0_i32_0 : i32, i32
  }
  func.func @transform_5(%arg0: i32) -> (i32, i32) {
    %c0_i32 = arith.constant 0 : i32
    %c0_i32_0 = arith.constant 0 : i32
    return %arg0, %c0_i32 : i32, i32
  }
  func.func @transform_6(%arg0: i32) -> (i32, i32, i32) {
    %c0_i32 = arith.constant 0 : i32
    %c0_i32_0 = arith.constant 0 : i32
    %c0_i32_1 = arith.constant 0 : i32
    return %arg0, %c0_i32, %c0_i32_0 : i32, i32, i32
  }
}

</mosaic_0001>

<bundles_post_ra>
// kernel: tpu_custom_call.1
= control target key start
LH: loop header
LB: loop body
LE: loop exit
PB: predicated region body
PF: predicated region fallthrough
CT: control target
= control target key end

     0   :  { %s1512_s0 = inlined_call_operand.hbm [shape: f32[16,128], index: 0, kind: input, shape index: {}]   ;;  %s1513_s1 = inlined_call_operand.hbm [shape: f32[8,128], index: 1, kind: input, shape index: {}]   ;;  %s1514_s2 = inlined_call_operand.hbm [shape: f32[128,256], index: 2, kind: input, shape index: {}]   ;;  %s1515_s3 = inlined_call_operand.vmem [shape: f32[1,256], index: 3, kind: input, shape index: {}]   ;;  %s1516_s4 = inlined_call_operand.hbm [shape: f32[256,128], index: 4, kind: input, shape index: {}]   ;;  %s1517_s5 = inlined_call_operand.hbm [shape: f32[16,128], index: 5, kind: output, shape index: {0}]   ;;  %s1518_s6 = inlined_call_operand.hbm [shape: s32[2,1,256], index: 6, kind: output, shape index: {1}]  }
   0x1   :  { %1523 = sst [smem:[#allocation20_spill]] %s1513_s1 }
   0x2   :  { %12 = vsyncpa [#allocation5], 0 }
   0x3   :  { %14 = vsyncpa [#allocation5 + $0x1], 0 }
   0x4   :  { %15 = vsyncpa [#allocation8], 0 }
   0x5   :  { %16 = vsyncpa [#allocation11], 0 }
   0x6   :  { %17 = vsyncpa [#allocation6], 0 }
   0x7   :  { %19 = vsyncpa [#allocation6 + $0x1], 0 }
   0x8   :  { %20 = vsyncpa [#allocation14], 0 }
   0x9   :  { %22 = vsyncpa [#allocation14 + $0x1], 0  ;;  %s1279_s21 = smov 0   ;;  %s1281_s22 = smov 0  }
   0xa   :  { %s1283_s23 = smov 0   ;;  %s1285_s24 = smov 0  }
   0xb LB: > { %s1300_s25 = sadd.s32 4294967295, %s1229_s24   ;;  %s871_s26 = sadd.s32 4294967294, %s1229_s24   ;;  %s1229_s24 = sphi %s1285_s24, %s1544_s24   ;;  %s1225_s23 = sphi %s1283_s23, %s1543_s23   ;;  %s1221_s22 = sphi %s1281_s22, %s1542_s22   ;;  %s1217_s21 = sphi %s1279_s21, %s1541_s21  }
   0xc   : > { %p48_p0 = scmp.ne.s32.totalorder %s1221_s22, %s1217_s21  ;;  %p1519_p1 = scmp.eq.s32.totalorder %s1300_s25, 0 }
   0xd   : > { %p162_p3 = scmp.eq.s32.totalorder %s871_s26, 1  ;;  %p872_p5 = scmp.ge.s32.totalorder %s1229_s24, 1 }
   0xe   : > { %p1309_p4 = por %p1519_p1, %p48_p0  ;;  %p195_p7 = scmp.lt.s32.totalorder %s1229_s24, 3 }
   0xf   : > { %p1314_p6 = por %p162_p3, %p48_p0  ;;  %s1231_s30 = smov [#allocation7]  }
  0x10   : > { %s1524_s27 = scalar_select %p1309_p4, 1, 0 }
  0x11   : > { %s1525_s28 = scalar_select %p1314_p6, 1, 0 }
  0x12   : > { %p1319_p8 = pnand %p872_p5, %p195_p7  ;;  %s208_s7 = sshll.u32 %s1231_s30, 4  ;;  %s209_s7 = int_to_ptr.vmem [resolvable:$true] %s208_s7 }
  0x13   : > { %s1232_s8 = smov [#allocation9]   ;;  %s1233_s11 = smov [#allocation10]  }
  0x14   : > { %s1526_s29 = scalar_select %p1319_p8, 1, 0 }
  0x15   : > { %p949_p10 = pneg %p1319_p8  ;;  %s218_s9 = sshll.u32 %s1232_s8, 4  ;;  %s219_s9 = int_to_ptr.vmem [resolvable:$true] %s218_s9 }
  0x16   : > { %s234_s12 = sshll.u32 %s1233_s11, 4  ;;  %s1032_s13 = scalar_lea.vmem %s209_s7, 128  ;;  %s235_s12 = int_to_ptr.vmem [resolvable:$true] %s234_s12 }
  0x17   : > { %p1328_p11 = pnand %p949_p10, %p1519_p1  ;;  %p1033_p13 = scmp.ne.s32.totalorder %s209_s7, %s1032_s13 }
  0x18   : > { %p1040_p5 = scmp.lt.s32.totalorder %s209_s7, %s209_s7  ;;  %p1041_p7 = scmp.lt.s32.totalorder %s1032_s13, %s1032_s13 }
  0x19   : > { %p1023_p12 = pneg %p1328_p11 }
  0x1a   : > { %p1042_p9 = por %p1041_p7, %p1040_p5 }
  0x1b   : > { %p1035_p0 = pnand %p1033_p13, %p1023_p12 }
  0x1d   : > { %p1036_p3 = pneg %p1035_p0 }
  0x1f   : > { %p1043_p10 = pnand %p1042_p9, %p1036_p3 }
  0x21   : > { %1046 = shalt.err (!%p1043_p10)
}
  0x22   : > { %s1528_s1 = sld [smem:[#allocation20_spill]]  ;;  %s1058_s16 = scalar_lea.vmem %s219_s9, 4096 }
  0x23   : > { %p1059_p1 = scmp.ne.s32.totalorder %s219_s9, %s1058_s16  ;;  %p1066_p13 = scmp.lt.s32.totalorder %s219_s9, %s219_s9 }
  0x24   : > { %p1067_p0 = scmp.lt.s32.totalorder %s1058_s16, %s1058_s16 }
  0x25   : > { %p1061_p2 = pnand %p1059_p1, %p1023_p12 }
  0x26   : > { %p1068_p4 = por %p1067_p0, %p1066_p13 }
  0x27   : > { %p1062_p6 = pneg %p1061_p2 }
  0x28   : > { %952 = dma.hbm_to_vmem [thread:$0]  (!%p1328_p11), %s1528_s1, 128, %s209_s7, [#allocation8]  }
  0x29   : > { %p1069_p8 = pnand %p1068_p4, %p1062_p6 }
  0x2b   : > { %1072 = shalt.err (!%p1069_p8)
}
  0x2c   : > { %s1234_s17 = smov 256   ;;  %s1235_s18 = smov 16  }
  0x2d   : > { %955 = dma.hbm_to_vmem [thread:$0]  (!%p1328_p11), %s1514_s2, 4096, %s219_s9, [#allocation8], %s1234_s17, %s1234_s17, %s1235_s18  }
  0x2e   : > { %s1084_s26 = scalar_lea.vmem %s235_s12, 4096  ;;  %p1092_p3 = scmp.lt.s32.totalorder %s235_s12, %s235_s12 }
  0x2f   : > { %p1085_p9 = scmp.ne.s32.totalorder %s235_s12, %s1084_s26  ;;  %p1093_p5 = scmp.lt.s32.totalorder %s1084_s26, %s1084_s26 }
  0x31   : > { %p1087_p1 = pnand %p1085_p9, %p1023_p12  ;;  %p1094_p4 = por %p1093_p5, %p1092_p3 }
  0x33   : > { %p1088_p2 = pneg %p1087_p1 }
  0x35   : > { %p1095_p6 = pnand %p1094_p4, %p1088_p2 }
  0x37   : > { %1098 = shalt.err (!%p1095_p6)
}
  0x38   : > { %s1236_s30 = smov 128   ;;  %s1237_s7 = smov 8  }
  0x39   : > { %958 = dma.hbm_to_vmem [thread:$0]  (!%p1328_p11), %s1516_s4, 4096, %s235_s12, [#allocation11], %s1236_s30, %s1236_s30, %s1237_s7  }
  0x3a   : > { %s1359_s11 = sadd.s32 1, %s1229_s24   ;;  %s35_s14 = sadd.s32 1, %s1225_s23 }
  0x3b   : > { %s32_s13 = ssub.s32 %s1229_s24, %s1359_s11  ;;  %p42_p12 = scmp.ne.s32.totalorder %s1225_s23, %s1221_s22 }
  0x3c   : > { %p33_p8 = scmp.eq.s32.totalorder %s32_s13, 0  ;;  %p43_p7 = scmp.eq.s32.totalorder %s1229_s24, 0 }
  0x3d   : > { %p973_p10 = scmp.lt.s32.totalorder %s1229_s24, 2  ;;  %p1529_p0 = scmp.eq.s32.totalorder %s1300_s25, 1 }
  0x3e   : > { %s1369_s15 = scalar_select %p33_p8, %s1225_s23, %s35_s14  }
  0x3f   : > { %p44_p13 = por %p43_p7, %p42_p12  ;;  %p1373_p9 = por %p1529_p0, %p42_p12 }
  0x40   : > { %s248_s10 = sand.u32 1, %s1225_s23   ;;  %s878_s17 = sshll.u32 %s1229_s24, 7 }
  0x41   : > { %s1530_s16 = scalar_select %p1373_p9, 1, 0 }
  0x42   : > { %s877_s12 = sshll.u32 %s248_s10, 3  ;;  %s1382_s20 = scalar_lea.hbm %s1512_s0, %s878_s17 }
  0x43   : > { %s252_s26 = scalar_lea.vmem [#allocation4], %s877_s12  ;;  %p1384_p11 = pnand %p973_p10, %p44_p13 }
  0x44   : > { %s259_s30 = sshll.u32 %s252_s26, 4  ;;  %s249_s8 = scalar_lea.sflag [#allocation5], %s248_s10  ;;  %s260_s30 = int_to_ptr.vmem [resolvable:$true] %s259_s30 }
  0x45   : > { %s1099_s9 = scalar_lea.hbm %s1382_s20, 128  ;;  %p1101_p2 = pneg %p1384_p11 }
  0x46   : > { %p1100_p1 = scmp.ne.s32.totalorder %s1382_s20, %s1099_s9  ;;  %s1104_s17 = scalar_lea.hbm %s1512_s0, 256 }
  0x47   : > { %p1105_p4 = scmp.lt.s32.totalorder %s1382_s20, %s1512_s0  ;;  %p1106_p6 = scmp.lt.s32.totalorder %s1104_s17, %s1099_s9 }
  0x48   : > { %p1102_p3 = pnand %p1101_p2, %p1100_p1 }
  0x49   : > { %p1107_p8 = por %p1106_p6, %p1105_p4 }
  0x4a   : > { %p1103_p5 = pneg %p1102_p3 }
  0x4c   : > { %p1108_p12 = pnand %p1107_p8, %p1103_p5 }
  0x4e   : > { %1111 = shalt.err (!%p1108_p12)
}
  0x4f   : > { %s1112_s19 = scalar_lea.vmem %s260_s30, 128  ;;  %s1238_s10 = smov [#allocation4]  }
  0x50   : > { %p1113_p7 = scmp.ne.s32.totalorder %s260_s30, %s1112_s19  ;;  %s1117_s26 = sshll.u32 %s1238_s10, 4  ;;  %s1118_s26 = int_to_ptr.vmem [resolvable:$false] %s1117_s26 }
  0x51   : > { %s1119_s1 = scalar_lea.vmem %s1118_s26, 256  ;;  %p1120_p0 = scmp.lt.s32.totalorder %s260_s30, %s1118_s26 }
  0x52   : > { %p1115_p10 = pnand %p1113_p7, %p1101_p2  ;;  %p1121_p1 = scmp.lt.s32.totalorder %s1119_s1, %s1112_s19 }
  0x54   : > { %p1116_p13 = pneg %p1115_p10  ;;  %p1122_p3 = por %p1121_p1, %p1120_p0 }
  0x56   : > { %p1123_p9 = pnand %p1122_p3, %p1116_p13 }
  0x58   : > { %1126 = shalt.err (!%p1123_p9)
}
  0x59   : > { %962 = dma.hbm_to_vmem [thread:$0]  (!%p1384_p11), %s1382_s20, 128, %s260_s30, %s249_s8  }
  0x5a   : > { %p1532_p5 = scmp.ne.s32.totalorder %s1526_s29, 0 }
  0x5b   : > { %s1405_s9 = sand.u32 (!%p1532_p5), 1, %s1221_s22   ;;  %p1533_p9 = scmp.ne.s32.totalorder (!%p1532_p5), %s1524_s27, 0 }
  0x5c   : > { %268 = sbr.rel (%p1532_p5) target bundleno = 2951 (0xb87), region = 40  ;;  %s880_s13 = sshll.u32 (!%p1532_p5), %s1405_s9, 3 }
  0x5d   : > { %s271_s14 = scalar_lea.sflag (!%p1532_p5), [#allocation5], %s1405_s9  ;;  %s1411_s1 = scalar_lea.vmem (!%p1532_p5), [#allocation4], %s880_s13 }
  0x61   : > { %1196 = dma.done.wait (%p1533_p9), %s271_s14, 128  }
  0x62   : > { %1198 = vsyncadd (%p1533_p9), %s271_s14, 4294967168  ;;  %p1534_p11 = scmp.eq.s32.totalorder %s1300_s25, 0 }
  0x64   : > { %1200 = dma.done.wait (%p1534_p11), [#allocation8], 4224   ;;  %p1535_p2 = pmov %p1534_p11 }
  0x66   : > { %1202 = vsyncadd (%p1535_p2), [#allocation8], 4294963072  ;;  %p1536_p4 = pmov %p1535_p2 }
  0x67   : > { %p1537_p6 = pmov %p1535_p2 }
  0x68   : > { %1204 = dma.done.wait (%p1536_p4), [#allocation11], 4096  }
  0x69   : > { %1206 = vsyncadd (%p1537_p6), [#allocation11], 4294963200  ;;  %v1239_v0 = vmov 0.0   ;;  %v354_v1 = vld [vmem:[#allocation9 + $0xf8] sm:$0xff]  ;;  %v353_v2 = vld [vmem:[#allocation9 + $0xf0] sm:$0xff]  ;;  %v357_v36 = vlaneseq  ;;  %s885_s20 = sshll.u32 %s1405_s9, 1 }
  0x6a   : > { %431 = vmatprep.mubr.f32.mxu0 %v1239_v0  ;;  %v352_v3 = vld [vmem:[#allocation9 + $0xe8] sm:$0xff]  ;;  %367 = vmatprep.subr.mxu0 %v354_v1  ;;  %v351_v4 = vld [vmem:[#allocation9 + $0xe0] sm:$0xff]  ;;  %v350_v5 = vld [vmem:[#allocation9 + $0xd8] sm:$0xff]  ;;  %s319_s30 = scalar_lea.vmem [#allocation13], %s885_s20  ;;  %s895_s7 = sshll.u32 %s1300_s25, 5 }
  0x6b   : > { %368 = vmatpush1.msra.mxu0 %v353_v2  ;;  %v349_v6 = vld [vmem:[#allocation9 + $0xd0] sm:$0xff]  ;;  %v348_v7 = vld [vmem:[#allocation9 + $0xc8] sm:$0xff]  ;;  %v347_v8 = vld [vmem:[#allocation9 + $0xc0] sm:$0xff]  ;;  %v1430_v37 = vshrl.u32 %v357_v36, 7  ;;  %s740_s8 = sshll.u32 %s319_s30, 4  ;;  %s738_s12 = scalar_lea.hbm %s1518_s6, %s895_s7  ;;  %s741_s8 = int_to_ptr.vmem [resolvable:$true] %s740_s8 }
  0x6c   : > { %369 = vmatprep.subr.mxu0 %v352_v3  ;;  %v346_v9 = vld [vmem:[#allocation9 + $0xb8] sm:$0xff]  ;;  %v345_v10 = vld [vmem:[#allocation9 + $0xb0] sm:$0xff]  ;;  %v344_v11 = vld [vmem:[#allocation9 + $0xa8] sm:$0xff]  ;;  %s713_s19 = scalar_lea.sflag [#allocation14], %s1405_s9  ;;  %s1127_s10 = scalar_lea.vmem %s741_s8, 32 }
  0x6d   : > { %370 = vmatpush1.msra.mxu0 %v351_v4  ;;  %v343_v12 = vld [vmem:[#allocation9 + $0xa0] sm:$0xff]  ;;  %v342_v13 = vld [vmem:[#allocation9 + $0x98] sm:$0xff]  ;;  %v341_v14 = vld [vmem:[#allocation9 + $0x90] sm:$0xff]  ;;  %v359_v38 = vsub.s32 0, %v1430_v37  ;;  %v363_v39 = vsub.s32 1, %v1430_v37  ;;  %p1128_p8 = scmp.ne.s32.totalorder %s741_s8, %s1127_s10  ;;  %p1538_p12 = scmp.ne.s32.totalorder %s1530_s16, 0 }
  0x6e   : > { %371 = vmatprep.subr.mxu0 %v350_v5  ;;  %v340_v15 = vld [vmem:[#allocation9 + $0x88] sm:$0xff]  ;;  %v339_v16 = vld [vmem:[#allocation9 + $0x80] sm:$0xff]  ;;  %v338_v17 = vld [vmem:[#allocation9 + $0x78] sm:$0xff]  ;;  %s1242_s26 = smov [#allocation13]  }
  0x6f   : > { %372 = vmatpush1.msra.mxu0 %v349_v6  ;;  %v337_v18 = vld [vmem:[#allocation9 + $0x70] sm:$0xff]  ;;  %v336_v19 = vld [vmem:[#allocation9 + $0x68] sm:$0xff]  ;;  %v335_v20 = vld [vmem:[#allocation9 + $0x60] sm:$0xff]  ;;  %p1129_p7 = pnand %p1128_p8, %p1538_p12  ;;  %s1131_s14 = sshll.u32 %s1242_s26, 4  ;;  %s1132_s14 = int_to_ptr.vmem [resolvable:$false] %s1131_s14 }
  0x70   : > { %373 = vmatprep.subr.mxu0 %v348_v7  ;;  %v334_v21 = vld [vmem:[#allocation9 + $0x58] sm:$0xff]  ;;  %v333_v22 = vld [vmem:[#allocation9 + $0x50] sm:$0xff]  ;;  %v332_v23 = vld [vmem:[#allocation9 + $0x48] sm:$0xff]  ;;  %p1134_p13 = scmp.lt.s32.totalorder %s741_s8, %s1132_s14 }
  0x71   : > { %374 = vmatpush1.msra.mxu0 %v347_v8  ;;  %v331_v24 = vld [vmem:[#allocation9 + $0x40] sm:$0xff]  ;;  %v330_v25 = vld [vmem:[#allocation9 + $0x38] sm:$0xff]  ;;  %v329_v26 = vld [vmem:[#allocation9 + $0x30] sm:$0xff]  ;;  %p1130_p10 = pneg %p1129_p7 }
  0x72   : > { %375 = vmatprep.subr.mxu0 %v346_v9  ;;  %v328_v27 = vld [vmem:[#allocation9 + $0x28] sm:$0xff]  ;;  %v327_v28 = vld [vmem:[#allocation9 + $0x20] sm:$0xff]  ;;  %v326_v29 = vld [vmem:[#allocation9 + $0x18] sm:$0xff] }
  0x73   : > { %376 = vmatpush1.msra.mxu0 %v345_v10  ;;  %v320_v30 = vld [vmem:[%s1411_s1] sm:$0xff]  ;;  %v1426_v31 = vld [vmem:[#allocation7] sm:$0xff]  ;;  %v323_v34 = vld [vmem:[#allocation9] sm:$0xff]  ;;  %s1133_s1 = scalar_lea.vmem %s1132_s14, 64 }
  0x74   : > { %377 = vmatprep.subr.mxu0 %v344_v11  ;;  %v325_v32 = vld [vmem:[#allocation9 + $0x10] sm:$0xff]  ;;  %v324_v33 = vld [vmem:[#allocation9 + $0x8] sm:$0xff]  ;;  %v322_v35 = vsub.f32 %v320_v30, %v1426_v31  ;;  %v355_v40 = vld [vmem:[%s1515_s3] sm:$0x3]  ;;  %p1135_p0 = scmp.lt.s32.totalorder %s1133_s1, %s1127_s10 }
  0x75   : > { %378 = vmatpush1.msra.mxu0 %v343_v12  ;;  %v360_v41 = vrot.slane %v355_v40, %v359_v38  ;;  %v364_v42 = vrot.slane %v355_v40, %v363_v39 }
  0x76   : > { %379 = vmatprep.subr.mxu0 %v342_v13  ;;  %p1136_p1 = por %p1135_p0, %p1134_p13 }
  0x77   : > { %380 = vmatpush1.msra.mxu0 %v341_v14 }
  0x78   : > { %381 = vmatprep.subr.mxu0 %v340_v15  ;;  %p1137_p3 = pnand %p1136_p1, %p1130_p10 }
  0x79   : > { %382 = vmatpush1.msra.mxu0 %v339_v16 }
  0x7a   : > { %383 = vmatprep.subr.mxu0 %v338_v17 }
  0x7b   : > { %384 = vmatpush1.msra.mxu0 %v337_v18 }
  0x7c   : > { %385 = vmatprep.subr.mxu0 %v336_v19 }
  0x7d   : > { %386 = vmatpush1.msra.mxu0 %v335_v20 }
  0x7e   : > { %387 = vmatprep.subr.mxu0 %v334_v21 }
  0x7f   : > { %388 = vmatpush1.msra.mxu0 %v333_v22 }
  0x80   : > { %389 = vmatprep.subr.mxu0 %v332_v23 }
  0x81   : > { %390 = vmatpush1.msra.mxu0 %v331_v24 }
  0x82   : > { %391 = vmatprep.subr.mxu0 %v330_v25 }
  0x83   : > { %392 = vmatpush1.msra.mxu0 %v329_v26 }
  0x84   : > { %393 = vmatprep.subr.mxu0 %v328_v27 }
  0x85   : > { %394 = vmatpush1.msra.mxu0 %v327_v28 }
  0x86   : > { %395 = vmatprep.subr.mxu0 %v326_v29 }
  0x87   : > { %396 = vmatpush1.msra.mxu0 %v325_v32 }
  0x88   : > { %397 = vmatprep.subr.mxu0 %v324_v33 }
  0x89   : > { %398 = vmatpush1.msra.mxu0 %v323_v34 }
  0x8a   : > { %432 = vmatmul.mubr.f32.vlgmr.msra.gmra.mxu0 %v322_v35 }
 0x14a   : > { %v433_v43 = vpop.f32.mrf.mxu0 }
 0x14b   : > { %v1437_v45 = vadd.f32 %v433_v43, %v360_v41 }
 0x14c   : > { %v435_v44 = vpop.f32.mrf.mxu0 }
 0x14d   : > { %v1439_v46 = vadd.f32 %v435_v44, %v364_v42 }
 0x14f   : > { %v445_v47 = vmax.f32 %v1437_v45, %v1439_v46 }
 0x151   : > { %446 = vmax.xlane.f32.xlu0 %v445_v47 }
 0x1da   : > { %v447_v48 = vpop.xlane.xlu0 %446 }
 0x1db   : > { %vm448_vm0 = vcmp.ge.f32.partialorder %v1437_v45, %v447_v48  ;;  %vm449_vm1 = vcmp.ge.f32.partialorder %v1439_v46, %v447_v48 }
 0x1dc   : > { %v450_v49 = vsel %vm448_vm0, -inf, %v1437_v45  ;;  %v451_v50 = vsel %vm449_vm1, -inf, %v1439_v46 }
 0x1dd   : > { %v452_v51 = vmax.f32 %v450_v49, %v451_v50 }
 0x1df   : > { %453 = vmax.xlane.f32.xlu0 %v452_v51  ;;  %v618_v51 = vld [vmem:[#allocation10 + $0x78] sm:$0xff] }
 0x268   : > { %v454_v52 = vpop.xlane.xlu0 %453 }
 0x269   : > { %vm455_vm2 = vcmp.ge.f32.partialorder %v450_v49, %v454_v52  ;;  %vm456_vm3 = vcmp.ge.f32.partialorder %v451_v50, %v454_v52  ;;  %v633_v52 = vld [vmem:[#allocation10 + $0xf0] sm:$0xff] }
 0x26a   : > { %v457_v53 = vsel %vm455_vm2, -inf, %v450_v49  ;;  %v458_v54 = vsel %vm456_vm3, -inf, %v451_v50  ;;  %v1240_v49 = vmov 0   ;;  %v634_v50 = vld [vmem:[#allocation10 + $0xf8] sm:$0xff] }
 0x26b   : > { %v459_v55 = vmax.f32 %v457_v53, %v458_v54  ;;  %1020 = vset.pattern.permute.xlu0 %v1240_v49  ;;  %896 = vmatprep.subr.mxu1 %v634_v50 }
 0x26c   : > { %897 = vmatpush3.msra.mxu1 %v618_v51 }
 0x26d   : > { %460 = vmax.xlane.f32.xlu1 %v459_v55  ;;  %898 = vmatprep.subr.mxu1 %v633_v52  ;;  %v616_v55 = vld [vmem:[#allocation10 + $0x68] sm:$0xff] }
 0x2f6   : > { %v461_v56 = vpop.xlane.xlu1 %460 }
 0x2f7   : > { %vm462_vm4 = vcmp.ge.f32.partialorder %v457_v53, %v461_v56  ;;  %vm463_vm5 = vcmp.ge.f32.partialorder %v458_v54, %v461_v56  ;;  %v631_v56 = vld [vmem:[#allocation10 + $0xe0] sm:$0xff] }
 0x2f8   : > { %v464_v57 = vsel %vm462_vm4, -inf, %v457_v53  ;;  %v465_v58 = vsel %vm463_vm5, -inf, %v458_v54  ;;  %v617_v53 = vld [vmem:[#allocation10 + $0x70] sm:$0xff]  ;;  %v632_v54 = vld [vmem:[#allocation10 + $0xe8] sm:$0xff] }
 0x2f9   : > { %v466_v59 = vmax.f32 %v464_v57, %v465_v58  ;;  %899 = vmatpush3.msra.mxu1 %v617_v53 }
 0x2fa   : > { %900 = vmatprep.subr.mxu1 %v632_v54 }
 0x2fb   : > { %467 = vmax.xlane.f32.xlu1 %v466_v59  ;;  %901 = vmatpush3.msra.mxu1 %v616_v55  ;;  %v614_v59 = vld [vmem:[#allocation10 + $0x58] sm:$0xff] }
 0x2fc   : > { %902 = vmatprep.subr.mxu1 %v631_v56 }
 0x384   : > { %v468_v60 = vpop.xlane.xlu1 %467 }
 0x385   : > { %vm469_vm6 = vcmp.ge.f32.partialorder %v464_v57, %v468_v60  ;;  %vm470_vm7 = vcmp.ge.f32.partialorder %v465_v58, %v468_v60  ;;  %v629_v60 = vld [vmem:[#allocation10 + $0xd0] sm:$0xff] }
 0x386   : > { %v471_v61 = vsel %vm469_vm6, -inf, %v464_v57  ;;  %v472_v62 = vsel %vm470_vm7, -inf, %v465_v58  ;;  %v615_v57 = vld [vmem:[#allocation10 + $0x60] sm:$0xff]  ;;  %v630_v58 = vld [vmem:[#allocation10 + $0xd8] sm:$0xff] }
 0x387   : > { %v473_v63 = vmax.f32 %v471_v61, %v472_v62  ;;  %903 = vmatpush3.msra.mxu1 %v615_v57 }
 0x388   : > { %904 = vmatprep.subr.mxu1 %v630_v58 }
 0x389   : > { %474 = vmax.xlane.f32.xlu0 %v473_v63  ;;  %905 = vmatpush3.msra.mxu1 %v614_v59  ;;  %v612_v63 = vld [vmem:[#allocation10 + $0x48] sm:$0xff] }
 0x38a   : > { %906 = vmatprep.subr.mxu1 %v629_v60 }
 0x412   : > { %v475_v0 = vpop.xlane.xlu0 %474 }
 0x413   : > { %vm476_vm8 = vcmp.ge.f32.partialorder %v471_v61, %v475_v0  ;;  %vm477_vm9 = vcmp.ge.f32.partialorder %v472_v62, %v475_v0  ;;  %v627_v0 = vld [vmem:[#allocation10 + $0xc0] sm:$0xff] }
 0x414   : > { %v478_v1 = vsel %vm476_vm8, -inf, %v471_v61  ;;  %v479_v2 = vsel %vm477_vm9, -inf, %v472_v62  ;;  %v613_v61 = vld [vmem:[#allocation10 + $0x50] sm:$0xff]  ;;  %v628_v62 = vld [vmem:[#allocation10 + $0xc8] sm:$0xff] }
 0x415   : > { %v480_v3 = vmax.f32 %v478_v1, %v479_v2  ;;  %907 = vmatpush3.msra.mxu1 %v613_v61 }
 0x416   : > { %908 = vmatprep.subr.mxu1 %v628_v62 }
 0x417   : > { %481 = vmax.xlane.f32.xlu1 %v480_v3  ;;  %909 = vmatpush3.msra.mxu1 %v612_v63  ;;  %v610_v3 = vld [vmem:[#allocation10 + $0x38] sm:$0xff] }
 0x418   : > { %910 = vmatprep.subr.mxu1 %v627_v0 }
 0x4a0   : > { %v482_v4 = vpop.xlane.xlu1 %481 }
 0x4a1   : > { %vm483_vm10 = vcmp.ge.f32.partialorder %v478_v1, %v482_v4  ;;  %vm484_vm11 = vcmp.ge.f32.partialorder %v479_v2, %v482_v4  ;;  %v625_v4 = vld [vmem:[#allocation10 + $0xb0] sm:$0xff] }
 0x4a2   : > { %v485_v5 = vsel %vm483_vm10, -inf, %v478_v1  ;;  %v486_v6 = vsel %vm484_vm11, -inf, %v479_v2  ;;  %v611_v1 = vld [vmem:[#allocation10 + $0x40] sm:$0xff]  ;;  %v626_v2 = vld [vmem:[#allocation10 + $0xb8] sm:$0xff] }
 0x4a3   : > { %v487_v7 = vmax.f32 %v485_v5, %v486_v6  ;;  %911 = vmatpush3.msra.mxu1 %v611_v1 }
 0x4a4   : > { %912 = vmatprep.subr.mxu1 %v626_v2 }
 0x4a5   : > { %488 = vmax.xlane.f32.xlu0 %v487_v7  ;;  %913 = vmatpush3.msra.mxu1 %v610_v3  ;;  %v608_v7 = vld [vmem:[#allocation10 + $0x28] sm:$0xff] }
 0x4a6   : > { %914 = vmatprep.subr.mxu1 %v625_v4 }
 0x52e   : > { %v489_v8 = vpop.xlane.xlu0 %488 }
 0x52f   : > { %vm490_vm12 = vcmp.ge.f32.partialorder %v485_v5, %v489_v8  ;;  %vm491_vm13 = vcmp.ge.f32.partialorder %v486_v6, %v489_v8  ;;  %v623_v8 = vld [vmem:[#allocation10 + $0xa0] sm:$0xff] }
 0x530   : > { %v492_v9 = vsel %vm490_vm12, -inf, %v485_v5  ;;  %v493_v10 = vsel %vm491_vm13, -inf, %v486_v6  ;;  %v609_v5 = vld [vmem:[#allocation10 + $0x30] sm:$0xff]  ;;  %v624_v6 = vld [vmem:[#allocation10 + $0xa8] sm:$0xff] }
 0x531   : > { %v494_v11 = vmax.f32 %v492_v9, %v493_v10  ;;  %915 = vmatpush3.msra.mxu1 %v609_v5 }
 0x532   : > { %916 = vmatprep.subr.mxu1 %v624_v6 }
 0x533   : > { %495 = vmax.xlane.f32.xlu1 %v494_v11  ;;  %917 = vmatpush3.msra.mxu1 %v608_v7  ;;  %v606_v11 = vld [vmem:[#allocation10 + $0x18] sm:$0xff] }
 0x534   : > { %918 = vmatprep.subr.mxu1 %v623_v8 }
 0x5bc   : > { %v496_v12 = vpop.xlane.xlu1 %495 }
 0x5bd   : > { %vm497_vm14 = vcmp.ge.f32.partialorder %v492_v9, %v496_v12  ;;  %vm498_vm15 = vcmp.ge.f32.partialorder %v493_v10, %v496_v12  ;;  %v621_v12 = vld [vmem:[#allocation10 + $0x90] sm:$0xff] }
 0x5be   : > { %v499_v13 = vsel %vm497_vm14, -inf, %v492_v9  ;;  %v500_v14 = vsel %vm498_vm15, -inf, %v493_v10  ;;  %v607_v9 = vld [vmem:[#allocation10 + $0x20] sm:$0xff]  ;;  %v622_v10 = vld [vmem:[#allocation10 + $0x98] sm:$0xff]  ;;  %vm553_vm14 = vcmask 7168  }
 0x5bf   : > { %v501_v15 = vmax.f32 %v499_v13, %v500_v14  ;;  %919 = vmatpush3.msra.mxu1 %v607_v9 }
 0x5c0   : > { %920 = vmatprep.subr.mxu1 %v622_v10 }
 0x5c1   : > { %502 = vmax.xlane.f32.xlu0 %v501_v15  ;;  %921 = vmatpush3.msra.mxu1 %v606_v11  ;;  %v604_v15 = vld [vmem:[#allocation10 + $0x8] sm:$0xff] }
 0x5c2   : > { %922 = vmatprep.subr.mxu1 %v621_v12 }
 0x64a   : > { %v503_v16 = vpop.xlane.xlu0 %502 }
 0x64b   : > { %vm504_vm0 = vcmp.ge.f32.partialorder %v499_v13, %v503_v16  ;;  %vm505_vm1 = vcmp.ge.f32.partialorder %v500_v14, %v503_v16 }
 0x64c   : > { %v506_v17 = vsel %vm504_vm0, -inf, %v499_v13  ;;  %v507_v18 = vsel %vm505_vm1, -inf, %v500_v14  ;;  %v605_v13 = vld [vmem:[#allocation10 + $0x10] sm:$0xff]  ;;  %v620_v14 = vld [vmem:[#allocation10 + $0x88] sm:$0xff]  ;;  %vm600_vm1 = vcmp.lt.s32.totalorder %v357_v36, 256 }
 0x64d   : > { %v508_v19 = vmax.f32 %v506_v17, %v507_v18  ;;  %923 = vmatpush3.msra.mxu1 %v605_v13 }
 0x64e   : > { %924 = vmatprep.subr.mxu1 %v620_v14 }
 0x64f   : > { %509 = vmax.xlane.f32.xlu1 %v508_v19  ;;  %925 = vmatpush3.msra.mxu1 %v604_v15 }
 0x6d8   : > { %v510_v20 = vpop.xlane.xlu1 %509 }
 0x6d9   : > { %vm511_vm2 = vcmp.ge.f32.partialorder %v506_v17, %v510_v20  ;;  %vm512_vm3 = vcmp.ge.f32.partialorder %v507_v18, %v510_v20 }
 0x6da   : > { %v513_v21 = vsel %vm511_vm2, -inf, %v506_v17  ;;  %v514_v22 = vsel %vm512_vm3, -inf, %v507_v18  ;;  %v619_v17 = vld [vmem:[#allocation10 + $0x80] sm:$0xff] }
 0x6db   : > { %v515_v23 = vmax.f32 %v513_v21, %v514_v22  ;;  %926 = vmatprep.subr.mxu1 %v619_v17  ;;  %v603_v18 = vld [vmem:[#allocation10] sm:$0xff] }
 0x6dc   : > { %927 = vmatpush3.msra.mxu1 %v603_v18 }
 0x6dd   : > { %516 = vmax.xlane.f32.xlu0 %v515_v23 }
 0x766   : > { %v517_v24 = vpop.xlane.xlu0 %516 }
 0x767   : > { %vm518_vm4 = vcmp.ge.f32.partialorder %v513_v21, %v517_v24  ;;  %vm519_vm5 = vcmp.ge.f32.partialorder %v514_v22, %v517_v24 }
 0x768   : > { %v520_v25 = vsel %vm518_vm4, -inf, %v513_v21  ;;  %v521_v26 = vsel %vm519_vm5, -inf, %v514_v22  ;;  %v566_v21 = vmax.f32 %v1439_v46, 0.0  ;;  %v565_v22 = vmax.f32 %v1437_v45, 0.0 }
 0x769   : > { %v522_v27 = vmax.f32 %v520_v25, %v521_v26 }
 0x76b   : > { %523 = vmax.xlane.f32.xlu1 %v522_v27 }
 0x7f4   : > { %v524_v28 = vpop.xlane.xlu1 %523 }
 0x7f5   : > { %vm525_vm6 = vcmp.ge.f32.partialorder %v520_v25, %v524_v28  ;;  %vm526_vm7 = vcmp.ge.f32.partialorder %v521_v26, %v524_v28 }
 0x7f6   : > { %v527_v29 = vsel %vm525_vm6, -inf, %v520_v25  ;;  %v528_v30 = vsel %vm526_vm7, -inf, %v521_v26 }
 0x7f7   : > { %v529_v32 = vmax.f32 %v527_v29, %v528_v30 }
 0x7f9   : > { %530 = vmax.xlane.f32.xlu0 %v529_v32 }
 0x882   : > { %v531_v33 = vpop.xlane.xlu0 %530 }
 0x883   : > { %vm532_vm8 = vcmp.ge.f32.partialorder %v527_v29, %v531_v33  ;;  %vm533_vm9 = vcmp.ge.f32.partialorder %v528_v30, %v531_v33 }
 0x884   : > { %v534_v34 = vsel %vm532_vm8, -inf, %v527_v29  ;;  %v535_v35 = vsel %vm533_vm9, -inf, %v528_v30  ;;  %v1241_v29 = vmov 1966171168  }
 0x885   : > { %v536_v38 = vmax.f32 %v534_v34, %v535_v35  ;;  %v585_v30 = vunpack.c.l.s4 %v1241_v29 }
 0x887   : > { %537 = vmax.xlane.f32.xlu1 %v536_v38 }
 0x910   : > { %v538_v39 = vpop.xlane.xlu1 %537 }
 0x911   : > { %vm539_vm10 = vcmp.ge.f32.partialorder %v534_v34, %v538_v39  ;;  %vm540_vm11 = vcmp.ge.f32.partialorder %v535_v35, %v538_v39 }
 0x912   : > { %v541_v40 = vsel %vm539_vm10, -inf, %v534_v34  ;;  %v542_v41 = vsel %vm540_vm11, -inf, %v535_v35  ;;  %v586_v35 = vunpack.c.0.s8 %v585_v30 }
 0x913   : > { %v543_v42 = vmax.f32 %v541_v40, %v542_v41 }
 0x915   : > { %544 = vmax.xlane.f32.xlu0 %v543_v42 }
 0x99e   : > { %v545_v43 = vpop.xlane.xlu0 %544 }
 0x99f   : > { %vm546_vm12 = vcmp.ge.f32.partialorder %v541_v40, %v545_v43  ;;  %vm547_vm13 = vcmp.ge.f32.partialorder %v542_v41, %v545_v43 }
 0x9a0   : > { %v548_v44 = vsel %vm546_vm12, -inf, %v541_v40  ;;  %v549_v47 = vsel %vm547_vm13, -inf, %v542_v41  ;;  %v589_v41 = vsub.s32 %v586_v35, %v1430_v37 }
 0x9a1   : > { %v550_v48 = vmax.f32 %v548_v44, %v549_v47 }
 0x9a3   : > { %551 = vmax.xlane.f32.xlu1 %v550_v48 }
 0xa2c   : > { %v552_v16 = vpop.xlane.xlu1 %551 }
 0xa2d   : > { %554 = vst.msk [vmem:[#allocation3] sm:$0xff] %vm553_vm14, %v552_v16 }
 0xa34   : > { %v557_v19 = vld [vmem:[#allocation3] sm:$0xff] }
 0xa35   : > { %560 = vperm.xlu0 %1020, %v557_v19  }
 0xab0   : > { %v561_v20 = vpop.permute.xlu0 %560 }
 0xab1   : > { %vm563_vm15 = vcmp.ge.f32.partialorder %v1437_v45, %v561_v20  ;;  %vm564_vm0 = vcmp.ge.f32.partialorder %v1439_v46, %v561_v20 }
 0xab2   : > { %v569_v23 = vsel %vm563_vm15, 1, %v1240_v49  ;;  %v570_v24 = vsel %vm564_vm0, 1, %v1240_v49  ;;  %886 = vmatprep.mubr.msk.f32.mxu1 %vm564_vm0, %v566_v21 }
 0xab3   : > { %v571_v25 = vrot.slane %v569_v23, 4  ;;  %v577_v26 = vrot.slane %v570_v24, 4  ;;  %887 = vmatmul.mubr.msk.f32.vlgmr.msra.gmra.mxu1 %vm563_vm15, %v565_v22 }
 0xab5   : > { %v572_v27 = vadd.s32 %v571_v25, %v569_v23  ;;  %v578_v28 = vadd.s32 %v577_v26, %v570_v24 }
 0xab7   : > { %v573_v32 = vrot.slane %v572_v27, 2  ;;  %v579_v33 = vrot.slane %v578_v28, 2 }
 0xab9   : > { %v574_v34 = vadd.s32 %v573_v32, %v572_v27  ;;  %v580_v46 = vadd.s32 %v579_v33, %v578_v28 }
 0xabb   : > { %v575_v45 = vrot.slane %v574_v34, 1  ;;  %v581_v38 = vrot.slane %v580_v46, 1 }
 0xabd   : > { %v576_v39 = vadd.s32 %v575_v45, %v574_v34  ;;  %v582_v40 = vadd.s32 %v581_v38, %v580_v46 }
 0xabf   : > { %v583_v42 = vcombine.low %v576_v39, %v582_v40 }
 0xac1   : > { %v590_v43 = vrot.slane %v583_v42, %v589_v41 }
 0xac3   : > { %v597_v44 = vrot.slane %v590_v43, %v589_v41 }
 0xac5   : > { %602 = vst.msk [vmem:[%s319_s30] sm:$0x3] %vm600_vm1, %v597_v44 }
 0xac6   : > { %1140 = shalt.err (!%p1137_p3)
}
 0xac7   : > { %s1141_s27 = scalar_lea.hbm %s738_s12, 32  ;;  %s1145_s30 = scalar_lea.hbm %s1518_s6, 64 }
 0xac8   : > { %p1142_p5 = scmp.ne.s32.totalorder %s738_s12, %s1141_s27  ;;  %p1146_p2 = scmp.lt.s32.totalorder %s738_s12, %s1518_s6 }
 0xac9   : > { %p1147_p4 = scmp.lt.s32.totalorder %s1145_s30, %s1141_s27 }
 0xaca   : > { %p1143_p9 = pnand %p1142_p5, %p1538_p12 }
 0xacb   : > { %p1148_p6 = por %p1147_p4, %p1146_p2 }
 0xacc   : > { %p1144_p11 = pneg %p1143_p9 }
 0xace   : > { %p1149_p8 = pnand %p1148_p6, %p1144_p11 }
 0xad0   : > { %1152 = shalt.err (!%p1149_p8)
}
 0xad1   : > { %946 = dma.vmem_to_hbm [thread:$0]  (%p1538_p12), %s741_s8, 32, %s738_s12, %s713_s19  }
 0xad2   : > { %s890_s18 = sshll.u32 %s1300_s25, 7  ;;  %s312_s10 = scalar_lea.vmem [#allocation12], %s880_s13 }
 0xad3   : > { %s726_s26 = sshll.u32 %s312_s10, 4  ;;  %s724_s27 = scalar_lea.hbm %s1517_s5, %s890_s18  ;;  %s727_s26 = int_to_ptr.vmem [resolvable:$true] %s726_s26 }
 0xad4   : > { %s708_s29 = scalar_lea.sflag [#allocation6], %s1405_s9  ;;  %s1153_s20 = scalar_lea.vmem %s727_s26, 128 }
 0xad5   : > { %p1154_p7 = scmp.ne.s32.totalorder %s727_s26, %s1153_s20  ;;  %s1243_s8 = smov [#allocation12]  }
 0xad6   : > { %s1157_s25 = sshll.u32 %s1243_s8, 4  ;;  %s1158_s25 = int_to_ptr.vmem [resolvable:$false] %s1157_s25 }
 0xad7   : > { %p1155_p10 = pnand %p1154_p7, %p1538_p12  ;;  %s1159_s13 = scalar_lea.vmem %s1158_s25, 256 }
 0xad8   : > { %p1160_p0 = scmp.lt.s32.totalorder %s727_s26, %s1158_s25  ;;  %p1161_p1 = scmp.lt.s32.totalorder %s1159_s13, %s1153_s20 }
 0xad9   : > { %p1156_p13 = pneg %p1155_p10 }
 0xada   : > { %p1162_p3 = por %p1161_p1, %p1160_p0 }
 0xadc   : > { %p1163_p5 = pnand %p1162_p3, %p1156_p13 }
 0xb73   : > { %v928_v36 = vpop.f32.mrf.mxu1 }
 0xb75   : > { %v929_v37 = vpop.f32.mrf.mxu1 }
 0xb76   : > { %v930_v47 = vadd.f32 %v929_v37, %v928_v36 }
 0xb78   : > { %v703_v48 = vadd.f32 %v930_v47, %v1426_v31 }
 0xb7a   : > { %706 = vst [vmem:[%s312_s10] sm:$0xff] %v703_v48 }
 0xb7b   : > { %1166 = shalt.err (!%p1163_p5)
}
 0xb7c   : > { %s1167_s12 = scalar_lea.hbm %s724_s27, 128  ;;  %s1171_s30 = scalar_lea.hbm %s1517_s5, 256 }
 0xb7d   : > { %p1168_p9 = scmp.ne.s32.totalorder %s724_s27, %s1167_s12  ;;  %p1172_p4 = scmp.lt.s32.totalorder %s724_s27, %s1517_s5 }
 0xb7e   : > { %p1173_p6 = scmp.lt.s32.totalorder %s1171_s30, %s1167_s12 }
 0xb7f   : > { %p1169_p11 = pnand %p1168_p9, %p1538_p12 }
 0xb80   : > { %p1174_p8 = por %p1173_p6, %p1172_p4 }
 0xb81   : > { %p1170_p2 = pneg %p1169_p11 }
 0xb83   : > { %p1175_p7 = pnand %p1174_p8, %p1170_p2 }
 0xb85   : > { %1178 = shalt.err (!%p1175_p7)
}
 0xb86   : > { %945 = dma.vmem_to_hbm [thread:$0]  (%p1538_p12), %s727_s26, 128, %s724_s27, %s708_s29  }
 0xb87 PF: > { %s752_s18 = sand.u32 1, %s1217_s21   ;;  %p1539_p10 = scmp.ne.s32.totalorder %s1525_s28, 0 }
 0xb88   : > { %p1540_p13 = scmp.ge.s32.totalorder %s1229_s24, 2  ;;  %s753_s10 = scalar_lea.sflag [#allocation6], %s752_s18 }
 0xb8a   : > { %p964_p0 = pnand %p1540_p13, %p1539_p10 }
 0xb8c   : > { %p965_p1 = pneg %p964_p0 }
 0xb8e   : > { %1208 = dma.done.wait (%p965_p1), %s753_s10, 128  }
 0xb8f   : > { %1210 = vsyncadd (%p965_p1), %s753_s10, 4294967168  ;;  %s762_s14 = scalar_lea.sflag [#allocation14], %s752_s18 }
 0xb90   : > { %1212 = dma.done.wait (%p965_p1), %s762_s14, 32  }
 0xb91   : > { %1214 = vsyncadd (%p965_p1), %s762_s14, 4294967264  ;;  %p25_p12 = scmp.ge.s32.totalorder %s1359_s11, 4   ;;  %s1541_s21 = smov %s1221_s22 }
 0xb92   : > { %s1542_s22 = smov %s1225_s23  ;;  %s1543_s23 = smov %s1369_s15 }
 0xb93   : > { %s1544_s24 = smov %s1359_s11  ;;  %27 = sbr.rel (!%p25_p12) target bundleno = 11 (0xb), region = 115 }
 0xb98   :  { %767 = vsyncpa [#allocation5], 1 }
 0xb99   :  { %769 = vsyncpa [#allocation5 + $0x1], 1 }
 0xb9a   :  { %770 = vsyncpa [#allocation8], 1 }
 0xb9b   :  { %771 = vsyncpa [#allocation11], 1 }
 0xb9c   :  { %772 = vsyncpa [#allocation6], 1 }
 0xb9d   :  { %774 = vsyncpa [#allocation6 + $0x1], 1 }
 0xb9e   :  { %775 = vsyncpa [#allocation14], 1 }
 0xb9f   :  { %777 = vsyncpa [#allocation14 + $0x1], 1 }

// kernel: tpu_custom_call.1
= control target key start
LH: loop header
LB: loop body
LE: loop exit
PB: predicated region body
PF: predicated region fallthrough
CT: control target
= control target key end

     0   :  { %s1512_s0 = inlined_call_operand.hbm [shape: f32[16,128], index: 0, kind: input, shape index: {}]   ;;  %s1513_s1 = inlined_call_operand.hbm [shape: f32[8,128], index: 1, kind: input, shape index: {}]   ;;  %s1514_s2 = inlined_call_operand.hbm [shape: f32[128,256], index: 2, kind: input, shape index: {}]   ;;  %s1515_s3 = inlined_call_operand.vmem [shape: f32[1,256], index: 3, kind: input, shape index: {}]   ;;  %s1516_s4 = inlined_call_operand.hbm [shape: f32[256,128], index: 4, kind: input, shape index: {}]   ;;  %s1517_s5 = inlined_call_operand.hbm [shape: f32[16,128], index: 5, kind: output, shape index: {0}]   ;;  %s1518_s6 = inlined_call_operand.hbm [shape: s32[2,1,256], index: 6, kind: output, shape index: {1}]  }
   0x1   :  { %1523 = sst [smem:[#allocation20_spill]] %s1513_s1 }
   0x2   :  { %12 = vsyncpa [#allocation5], 0 }
   0x3   :  { %14 = vsyncpa [#allocation5 + $0x1], 0 }
   0x4   :  { %15 = vsyncpa [#allocation8], 0 }
   0x5   :  { %16 = vsyncpa [#allocation11], 0 }
   0x6   :  { %17 = vsyncpa [#allocation6], 0 }
   0x7   :  { %19 = vsyncpa [#allocation6 + $0x1], 0 }
   0x8   :  { %20 = vsyncpa [#allocation14], 0 }
   0x9   :  { %22 = vsyncpa [#allocation14 + $0x1], 0  ;;  %s1279_s21 = smov 0   ;;  %s1281_s22 = smov 0  }
   0xa   :  { %s1283_s23 = smov 0   ;;  %s1285_s24 = smov 0  }
   0xb LB: > { %s1300_s25 = sadd.s32 4294967295, %s1229_s24   ;;  %s871_s26 = sadd.s32 4294967294, %s1229_s24   ;;  %s1229_s24 = sphi %s1285_s24, %s1544_s24   ;;  %s1225_s23 = sphi %s1283_s23, %s1543_s23   ;;  %s1221_s22 = sphi %s1281_s22, %s1542_s22   ;;  %s1217_s21 = sphi %s1279_s21, %s1541_s21  }
   0xc   : > { %p48_p0 = scmp.ne.s32.totalorder %s1221_s22, %s1217_s21  ;;  %p1519_p1 = scmp.eq.s32.totalorder %s1300_s25, 0 }
   0xd   : > { %p162_p3 = scmp.eq.s32.totalorder %s871_s26, 1  ;;  %p872_p5 = scmp.ge.s32.totalorder %s1229_s24, 1 }
   0xe   : > { %p1309_p4 = por %p1519_p1, %p48_p0  ;;  %p195_p7 = scmp.lt.s32.totalorder %s1229_s24, 3 }
   0xf   : > { %p1314_p6 = por %p162_p3, %p48_p0  ;;  %s1231_s30 = smov [#allocation7]  }
  0x10   : > { %s1524_s27 = scalar_select %p1309_p4, 1, 0 }
  0x11   : > { %s1525_s28 = scalar_select %p1314_p6, 1, 0 }
  0x12   : > { %p1319_p8 = pnand %p872_p5, %p195_p7  ;;  %s208_s7 = sshll.u32 %s1231_s30, 4  ;;  %s209_s7 = int_to_ptr.vmem [resolvable:$true] %s208_s7 }
  0x13   : > { %s1232_s8 = smov [#allocation9]   ;;  %s1233_s11 = smov [#allocation10]  }
  0x14   : > { %s1526_s29 = scalar_select %p1319_p8, 1, 0 }
  0x15   : > { %p949_p10 = pneg %p1319_p8  ;;  %s218_s9 = sshll.u32 %s1232_s8, 4  ;;  %s219_s9 = int_to_ptr.vmem [resolvable:$true] %s218_s9 }
  0x16   : > { %s234_s12 = sshll.u32 %s1233_s11, 4  ;;  %s1032_s13 = scalar_lea.vmem %s209_s7, 128  ;;  %s235_s12 = int_to_ptr.vmem [resolvable:$true] %s234_s12 }
  0x17   : > { %p1328_p11 = pnand %p949_p10, %p1519_p1  ;;  %p1033_p13 = scmp.ne.s32.totalorder %s209_s7, %s1032_s13 }
  0x18   : > { %p1040_p5 = scmp.lt.s32.totalorder %s209_s7, %s209_s7  ;;  %p1041_p7 = scmp.lt.s32.totalorder %s1032_s13, %s1032_s13 }
  0x19   : > { %p1023_p12 = pneg %p1328_p11 }
  0x1a   : > { %p1042_p9 = por %p1041_p7, %p1040_p5 }
  0x1b   : > { %p1035_p0 = pnand %p1033_p13, %p1023_p12 }
  0x1d   : > { %p1036_p3 = pneg %p1035_p0 }
  0x1f   : > { %p1043_p10 = pnand %p1042_p9, %p1036_p3 }
  0x21   : > { %1046 = shalt.err (!%p1043_p10)
}
  0x22   : > { %s1528_s1 = sld [smem:[#allocation20_spill]]  ;;  %s1058_s16 = scalar_lea.vmem %s219_s9, 4096 }
  0x23   : > { %p1059_p1 = scmp.ne.s32.totalorder %s219_s9, %s1058_s16  ;;  %p1066_p13 = scmp.lt.s32.totalorder %s219_s9, %s219_s9 }
  0x24   : > { %p1067_p0 = scmp.lt.s32.totalorder %s1058_s16, %s1058_s16 }
  0x25   : > { %p1061_p2 = pnand %p1059_p1, %p1023_p12 }
  0x26   : > { %p1068_p4 = por %p1067_p0, %p1066_p13 }
  0x27   : > { %p1062_p6 = pneg %p1061_p2 }
  0x28   : > { %952 = dma.hbm_to_vmem [thread:$0]  (!%p1328_p11), %s1528_s1, 128, %s209_s7, [#allocation8]  }
  0x29   : > { %p1069_p8 = pnand %p1068_p4, %p1062_p6 }
  0x2b   : > { %1072 = shalt.err (!%p1069_p8)
}
  0x2c   : > { %s1234_s17 = smov 256   ;;  %s1235_s18 = smov 16  }
  0x2d   : > { %955 = dma.hbm_to_vmem [thread:$0]  (!%p1328_p11), %s1514_s2, 4096, %s219_s9, [#allocation8], %s1234_s17, %s1234_s17, %s1235_s18  }
  0x2e   : > { %s1084_s26 = scalar_lea.vmem %s235_s12, 4096  ;;  %p1092_p3 = scmp.lt.s32.totalorder %s235_s12, %s235_s12 }
  0x2f   : > { %p1085_p9 = scmp.ne.s32.totalorder %s235_s12, %s1084_s26  ;;  %p1093_p5 = scmp.lt.s32.totalorder %s1084_s26, %s1084_s26 }
  0x31   : > { %p1087_p1 = pnand %p1085_p9, %p1023_p12  ;;  %p1094_p4 = por %p1093_p5, %p1092_p3 }
  0x33   : > { %p1088_p2 = pneg %p1087_p1 }
  0x35   : > { %p1095_p6 = pnand %p1094_p4, %p1088_p2 }
  0x37   : > { %1098 = shalt.err (!%p1095_p6)
}
  0x38   : > { %s1236_s30 = smov 128   ;;  %s1237_s7 = smov 8  }
  0x39   : > { %958 = dma.hbm_to_vmem [thread:$0]  (!%p1328_p11), %s1516_s4, 4096, %s235_s12, [#allocation11], %s1236_s30, %s1236_s30, %s1237_s7  }
  0x3a   : > { %s1359_s11 = sadd.s32 1, %s1229_s24   ;;  %s35_s14 = sadd.s32 1, %s1225_s23 }
  0x3b   : > { %s32_s13 = ssub.s32 %s1229_s24, %s1359_s11  ;;  %p42_p12 = scmp.ne.s32.totalorder %s1225_s23, %s1221_s22 }
  0x3c   : > { %p33_p8 = scmp.eq.s32.totalorder %s32_s13, 0  ;;  %p43_p7 = scmp.eq.s32.totalorder %s1229_s24, 0 }
  0x3d   : > { %p973_p10 = scmp.lt.s32.totalorder %s1229_s24, 2  ;;  %p1529_p0 = scmp.eq.s32.totalorder %s1300_s25, 1 }
  0x3e   : > { %s1369_s15 = scalar_select %p33_p8, %s1225_s23, %s35_s14  }
  0x3f   : > { %p44_p13 = por %p43_p7, %p42_p12  ;;  %p1373_p9 = por %p1529_p0, %p42_p12 }
  0x40   : > { %s248_s10 = sand.u32 1, %s1225_s23   ;;  %s878_s17 = sshll.u32 %s1229_s24, 7 }
  0x41   : > { %s1530_s16 = scalar_select %p1373_p9, 1, 0 }
  0x42   : > { %s877_s12 = sshll.u32 %s248_s10, 3  ;;  %s1382_s20 = scalar_lea.hbm %s1512_s0, %s878_s17 }
  0x43   : > { %s252_s26 = scalar_lea.vmem [#allocation4], %s877_s12  ;;  %p1384_p11 = pnand %p973_p10, %p44_p13 }
  0x44   : > { %s259_s30 = sshll.u32 %s252_s26, 4  ;;  %s249_s8 = scalar_lea.sflag [#allocation5], %s248_s10  ;;  %s260_s30 = int_to_ptr.vmem [resolvable:$true] %s259_s30 }
  0x45   : > { %s1099_s9 = scalar_lea.hbm %s1382_s20, 128  ;;  %p1101_p2 = pneg %p1384_p11 }
  0x46   : > { %p1100_p1 = scmp.ne.s32.totalorder %s1382_s20, %s1099_s9  ;;  %s1104_s17 = scalar_lea.hbm %s1512_s0, 256 }
  0x47   : > { %p1105_p4 = scmp.lt.s32.totalorder %s1382_s20, %s1512_s0  ;;  %p1106_p6 = scmp.lt.s32.totalorder %s1104_s17, %s1099_s9 }
  0x48   : > { %p1102_p3 = pnand %p1101_p2, %p1100_p1 }
  0x49   : > { %p1107_p8 = por %p1106_p6, %p1105_p4 }
  0x4a   : > { %p1103_p5 = pneg %p1102_p3 }
  0x4c   : > { %p1108_p12 = pnand %p1107_p8, %p1103_p5 }
  0x4e   : > { %1111 = shalt.err (!%p1108_p12)
}
  0x4f   : > { %s1112_s19 = scalar_lea.vmem %s260_s30, 128  ;;  %s1238_s10 = smov [#allocation4]  }
  0x50   : > { %p1113_p7 = scmp.ne.s32.totalorder %s260_s30, %s1112_s19  ;;  %s1117_s26 = sshll.u32 %s1238_s10, 4  ;;  %s1118_s26 = int_to_ptr.vmem [resolvable:$false] %s1117_s26 }
  0x51   : > { %s1119_s1 = scalar_lea.vmem %s1118_s26, 256  ;;  %p1120_p0 = scmp.lt.s32.totalorder %s260_s30, %s1118_s26 }
  0x52   : > { %p1115_p10 = pnand %p1113_p7, %p1101_p2  ;;  %p1121_p1 = scmp.lt.s32.totalorder %s1119_s1, %s1112_s19 }
  0x54   : > { %p1116_p13 = pneg %p1115_p10  ;;  %p1122_p3 = por %p1121_p1, %p1120_p0 }
  0x56   : > { %p1123_p9 = pnand %p1122_p3, %p1116_p13 }
  0x58   : > { %1126 = shalt.err (!%p1123_p9)
}
  0x59   : > { %962 = dma.hbm_to_vmem [thread:$0]  (!%p1384_p11), %s1382_s20, 128, %s260_s30, %s249_s8  }
  0x5a   : > { %p1532_p5 = scmp.ne.s32.totalorder %s1526_s29, 0 }
  0x5b   : > { %s1405_s9 = sand.u32 (!%p1532_p5), 1, %s1221_s22   ;;  %p1533_p9 = scmp.ne.s32.totalorder (!%p1532_p5), %s1524_s27, 0 }
  0x5c   : > { %268 = sbr.rel (%p1532_p5) target bundleno = 2951 (0xb87), region = 40  ;;  %s880_s13 = sshll.u32 (!%p1532_p5), %s1405_s9, 3 }
  0x5d   : > { %s271_s14 = scalar_lea.sflag (!%p1532_p5), [#allocation5], %s1405_s9  ;;  %s1411_s1 = scalar_lea.vmem (!%p1532_p5), [#allocation4], %s880_s13 }
  0x61   : > { %1196 = dma.done.wait (%p1533_p9), %s271_s14, 128  }
  0x62   : > { %1198 = vsyncadd (%p1533_p9), %s271_s14, 4294967168  ;;  %p1534_p11 = scmp.eq.s32.totalorder %s1300_s25, 0 }
  0x64   : > { %1200 = dma.done.wait (%p1534_p11), [#allocation8], 4224   ;;  %p1535_p2 = pmov %p1534_p11 }
  0x66   : > { %1202 = vsyncadd (%p1535_p2), [#allocation8], 4294963072  ;;  %p1536_p4 = pmov %p1535_p2 }
  0x67   : > { %p1537_p6 = pmov %p1535_p2 }
  0x68   : > { %1204 = dma.done.wait (%p1536_p4), [#allocation11], 4096  }
  0x69   : > { %1206 = vsyncadd (%p1537_p6), [#allocation11], 4294963200  ;;  %v1239_v0 = vmov 0.0   ;;  %v354_v1 = vld [vmem:[#allocation9 + $0xf8] sm:$0xff]  ;;  %v353_v2 = vld [vmem:[#allocation9 + $0xf0] sm:$0xff]  ;;  %v357_v36 = vlaneseq  ;;  %s885_s20 = sshll.u32 %s1405_s9, 1 }
  0x6a   : > { %431 = vmatprep.mubr.f32.mxu0 %v1239_v0  ;;  %v352_v3 = vld [vmem:[#allocation9 + $0xe8] sm:$0xff]  ;;  %367 = vmatprep.subr.mxu0 %v354_v1  ;;  %v351_v4 = vld [vmem:[#allocation9 + $0xe0] sm:$0xff]  ;;  %v350_v5 = vld [vmem:[#allocation9 + $0xd8] sm:$0xff]  ;;  %s319_s30 = scalar_lea.vmem [#allocation13], %s885_s20  ;;  %s895_s7 = sshll.u32 %s1300_s25, 5 }
  0x6b   : > { %368 = vmatpush1.msra.mxu0 %v353_v2  ;;  %v349_v6 = vld [vmem:[#allocation9 + $0xd0] sm:$0xff]  ;;  %v348_v7 = vld [vmem:[#allocation9 + $0xc8] sm:$0xff]  ;;  %v347_v8 = vld [vmem:[#allocation9 + $0xc0] sm:$0xff]  ;;  %v1430_v37 = vshrl.u32 %v357_v36, 7  ;;  %s740_s8 = sshll.u32 %s319_s30, 4  ;;  %s738_s12 = scalar_lea.hbm %s1518_s6, %s895_s7  ;;  %s741_s8 = int_to_ptr.vmem [resolvable:$true] %s740_s8 }
  0x6c   : > { %369 = vmatprep.subr.mxu0 %v352_v3  ;;  %v346_v9 = vld [vmem:[#allocation9 + $0xb8] sm:$0xff]  ;;  %v345_v10 = vld [vmem:[#allocation9 + $0xb0] sm:$0xff]  ;;  %v344_v11 = vld [vmem:[#allocation9 + $0xa8] sm:$0xff]  ;;  %s713_s19 = scalar_lea.sflag [#allocation14], %s1405_s9  ;;  %s1127_s10 = scalar_lea.vmem %s741_s8, 32 }
  0x6d   : > { %370 = vmatpush1.msra.mxu0 %v351_v4  ;;  %v343_v12 = vld [vmem:[#allocation9 + $0xa0] sm:$0xff]  ;;  %v342_v13 = vld [vmem:[#allocation9 + $0x98] sm:$0xff]  ;;  %v341_v14 = vld [vmem:[#allocation9 + $0x90] sm:$0xff]  ;;  %v359_v38 = vsub.s32 0, %v1430_v37  ;;  %v363_v39 = vsub.s32 1, %v1430_v37  ;;  %p1128_p8 = scmp.ne.s32.totalorder %s741_s8, %s1127_s10  ;;  %p1538_p12 = scmp.ne.s32.totalorder %s1530_s16, 0 }
  0x6e   : > { %371 = vmatprep.subr.mxu0 %v350_v5  ;;  %v340_v15 = vld [vmem:[#allocation9 + $0x88] sm:$0xff]  ;;  %v339_v16 = vld [vmem:[#allocation9 + $0x80] sm:$0xff]  ;;  %v338_v17 = vld [vmem:[#allocation9 + $0x78] sm:$0xff]  ;;  %s1242_s26 = smov [#allocation13]  }
  0x6f   : > { %372 = vmatpush1.msra.mxu0 %v349_v6  ;;  %v337_v18 = vld [vmem:[#allocation9 + $0x70] sm:$0xff]  ;;  %v336_v19 = vld [vmem:[#allocation9 + $0x68] sm:$0xff]  ;;  %v335_v20 = vld [vmem:[#allocation9 + $0x60] sm:$0xff]  ;;  %p1129_p7 = pnand %p1128_p8, %p1538_p12  ;;  %s1131_s14 = sshll.u32 %s1242_s26, 4  ;;  %s1132_s14 = int_to_ptr.vmem [resolvable:$false] %s1131_s14 }
  0x70   : > { %373 = vmatprep.subr.mxu0 %v348_v7  ;;  %v334_v21 = vld [vmem:[#allocation9 + $0x58] sm:$0xff]  ;;  %v333_v22 = vld [vmem:[#allocation9 + $0x50] sm:$0xff]  ;;  %v332_v23 = vld [vmem:[#allocation9 + $0x48] sm:$0xff]  ;;  %p1134_p13 = scmp.lt.s32.totalorder %s741_s8, %s1132_s14 }
  0x71   : > { %374 = vmatpush1.msra.mxu0 %v347_v8  ;;  %v331_v24 = vld [vmem:[#allocation9 + $0x40] sm:$0xff]  ;;  %v330_v25 = vld [vmem:[#allocation9 + $0x38] sm:$0xff]  ;;  %v329_v26 = vld [vmem:[#allocation9 + $0x30] sm:$0xff]  ;;  %p1130_p10 = pneg %p1129_p7 }
  0x72   : > { %375 = vmatprep.subr.mxu0 %v346_v9  ;;  %v328_v27 = vld [vmem:[#allocation9 + $0x28] sm:$0xff]  ;;  %v327_v28 = vld [vmem:[#allocation9 + $0x20] sm:$0xff]  ;;  %v326_v29 = vld [vmem:[#allocation9 + $0x18] sm:$0xff] }
  0x73   : > { %376 = vmatpush1.msra.mxu0 %v345_v10  ;;  %v320_v30 = vld [vmem:[%s1411_s1] sm:$0xff]  ;;  %v1426_v31 = vld [vmem:[#allocation7] sm:$0xff]  ;;  %v323_v34 = vld [vmem:[#allocation9] sm:$0xff]  ;;  %s1133_s1 = scalar_lea.vmem %s1132_s14, 64 }
  0x74   : > { %377 = vmatprep.subr.mxu0 %v344_v11  ;;  %v325_v32 = vld [vmem:[#allocation9 + $0x10] sm:$0xff]  ;;  %v324_v33 = vld [vmem:[#allocation9 + $0x8] sm:$0xff]  ;;  %v322_v35 = vsub.f32 %v320_v30, %v1426_v31  ;;  %v355_v40 = vld [vmem:[%s1515_s3] sm:$0x3]  ;;  %p1135_p0 = scmp.lt.s32.totalorder %s1133_s1, %s1127_s10 }
  0x75   : > { %378 = vmatpush1.msra.mxu0 %v343_v12  ;;  %v360_v41 = vrot.slane %v355_v40, %v359_v38  ;;  %v364_v42 = vrot.slane %v355_v40, %v363_v39 }
  0x76   : > { %379 = vmatprep.subr.mxu0 %v342_v13  ;;  %p1136_p1 = por %p1135_p0, %p1134_p13 }
  0x77   : > { %380 = vmatpush1.msra.mxu0 %v341_v14 }
  0x78   : > { %381 = vmatprep.subr.mxu0 %v340_v15  ;;  %p1137_p3 = pnand %p1136_p1, %p1130_p10 }
  0x79   : > { %382 = vmatpush1.msra.mxu0 %v339_v16 }
  0x7a   : > { %383 = vmatprep.subr.mxu0 %v338_v17 }
  0x7b   : > { %384 = vmatpush1.msra.mxu0 %v337_v18 }
  0x7c   : > { %385 = vmatprep.subr.mxu0 %v336_v19 }
  0x7d   : > { %386 = vmatpush1.msra.mxu0 %v335_v20 }
  0x7e   : > { %387 = vmatprep.subr.mxu0 %v334_v21 }
  0x7f   : > { %388 = vmatpush1.msra.mxu0 %v333_v22 }
  0x80   : > { %389 = vmatprep.subr.mxu0 %v332_v23 }
  0x81   : > { %390 = vmatpush1.msra.mxu0 %v331_v24 }
  0x82   : > { %391 = vmatprep.subr.mxu0 %v330_v25 }
  0x83   : > { %392 = vmatpush1.msra.mxu0 %v329_v26 }
  0x84   : > { %393 = vmatprep.subr.mxu0 %v328_v27 }
  0x85   : > { %394 = vmatpush1.msra.mxu0 %v327_v28 }
  0x86   : > { %395 = vmatprep.subr.mxu0 %v326_v29 }
  0x87   : > { %396 = vmatpush1.msra.mxu0 %v325_v32 }
  0x88   : > { %397 = vmatprep.subr.mxu0 %v324_v33 }
  0x89   : > { %398 = vmatpush1.msra.mxu0 %v323_v34 }
  0x8a   : > { %432 = vmatmul.mubr.f32.vlgmr.msra.gmra.mxu0 %v322_v35 }
 0x14a   : > { %v433_v43 = vpop.f32.mrf.mxu0 }
 0x14b   : > { %v1437_v45 = vadd.f32 %v433_v43, %v360_v41 }
 0x14c   : > { %v435_v44 = vpop.f32.mrf.mxu0 }
 0x14d   : > { %v1439_v46 = vadd.f32 %v435_v44, %v364_v42 }
 0x14f   : > { %v445_v47 = vmax.f32 %v1437_v45, %v1439_v46 }
 0x151   : > { %446 = vmax.xlane.f32.xlu0 %v445_v47 }
 0x1da   : > { %v447_v48 = vpop.xlane.xlu0 %446 }
 0x1db   : > { %vm448_vm0 = vcmp.ge.f32.partialorder %v1437_v45, %v447_v48  ;;  %vm449_vm1 = vcmp.ge.f32.partialorder %v1439_v46, %v447_v48 }
 0x1dc   : > { %v450_v49 = vsel %vm448_vm0, -inf, %v1437_v45  ;;  %v451_v50 = vsel %vm449_vm1, -inf, %v1439_v46 }
 0x1dd   : > { %v452_v51 = vmax.f32 %v450_v49, %v451_v50 }
 0x1df   : > { %453 = vmax.xlane.f32.xlu0 %v452_v51  ;;  %v618_v51 = vld [vmem:[#allocation10 + $0x78] sm:$0xff] }
 0x268   : > { %v454_v52 = vpop.xlane.xlu0 %453 }
 0x269   : > { %vm455_vm2 = vcmp.ge.f32.partialorder %v450_v49, %v454_v52  ;;  %vm456_vm3 = vcmp.ge.f32.partialorder %v451_v50, %v454_v52  ;;  %v633_v52 = vld [vmem:[#allocation10 + $0xf0] sm:$0xff] }
 0x26a   : > { %v457_v53 = vsel %vm455_vm2, -inf, %v450_v49  ;;  %v458_v54 = vsel %vm456_vm3, -inf, %v451_v50  ;;  %v1240_v49 = vmov 0   ;;  %v634_v50 = vld [vmem:[#allocation10 + $0xf8] sm:$0xff] }
 0x26b   : > { %v459_v55 = vmax.f32 %v457_v53, %v458_v54  ;;  %1020 = vset.pattern.permute.xlu0 %v1240_v49  ;;  %896 = vmatprep.subr.mxu1 %v634_v50 }
 0x26c   : > { %897 = vmatpush3.msra.mxu1 %v618_v51 }
 0x26d   : > { %460 = vmax.xlane.f32.xlu1 %v459_v55  ;;  %898 = vmatprep.subr.mxu1 %v633_v52  ;;  %v616_v55 = vld [vmem:[#allocation10 + $0x68] sm:$0xff] }
 0x2f6   : > { %v461_v56 = vpop.xlane.xlu1 %460 }
 0x2f7   : > { %vm462_vm4 = vcmp.ge.f32.partialorder %v457_v53, %v461_v56  ;;  %vm463_vm5 = vcmp.ge.f32.partialorder %v458_v54, %v461_v56  ;;  %v631_v56 = vld [vmem:[#allocation10 + $0xe0] sm:$0xff] }
 0x2f8   : > { %v464_v57 = vsel %vm462_vm4, -inf, %v457_v53  ;;  %v465_v58 = vsel %vm463_vm5, -inf, %v458_v54  ;;  %v617_v53 = vld [vmem:[#allocation10 + $0x70] sm:$0xff]  ;;  %v632_v54 = vld [vmem:[#allocation10 + $0xe8] sm:$0xff] }
 0x2f9   : > { %v466_v59 = vmax.f32 %v464_v57, %v465_v58  ;;  %899 = vmatpush3.msra.mxu1 %v617_v53 }
 0x2fa   : > { %900 = vmatprep.subr.mxu1 %v632_v54 }
 0x2fb   : > { %467 = vmax.xlane.f32.xlu1 %v466_v59  ;;  %901 = vmatpush3.msra.mxu1 %v616_v55  ;;  %v614_v59 = vld [vmem:[#allocation10 + $0x58] sm:$0xff] }
 0x2fc   : > { %902 = vmatprep.subr.mxu1 %v631_v56 }
 0x384   : > { %v468_v60 = vpop.xlane.xlu1 %467 }
 0x385   : > { %vm469_vm6 = vcmp.ge.f32.partialorder %v464_v57, %v468_v60  ;;  %vm470_vm7 = vcmp.ge.f32.partialorder %v465_v58, %v468_v60  ;;  %v629_v60 = vld [vmem:[#allocation10 + $0xd0] sm:$0xff] }
 0x386   : > { %v471_v61 = vsel %vm469_vm6, -inf, %v464_v57  ;;  %v472_v62 = vsel %vm470_vm7, -inf, %v465_v58  ;;  %v615_v57 = vld [vmem:[#allocation10 + $0x60] sm:$0xff]  ;;  %v630_v58 = vld [vmem:[#allocation10 + $0xd8] sm:$0xff] }
 0x387   : > { %v473_v63 = vmax.f32 %v471_v61, %v472_v62  ;;  %903 = vmatpush3.msra.mxu1 %v615_v57 }
 0x388   : > { %904 = vmatprep.subr.mxu1 %v630_v58 }
 0x389   : > { %474 = vmax.xlane.f32.xlu0 %v473_v63  ;;  %905 = vmatpush3.msra.mxu1 %v614_v59  ;;  %v612_v63 = vld [vmem:[#allocation10 + $0x48] sm:$0xff] }
 0x38a   : > { %906 = vmatprep.subr.mxu1 %v629_v60 }
 0x412   : > { %v475_v0 = vpop.xlane.xlu0 %474 }
 0x413   : > { %vm476_vm8 = vcmp.ge.f32.partialorder %v471_v61, %v475_v0  ;;  %vm477_vm9 = vcmp.ge.f32.partialorder %v472_v62, %v475_v0  ;;  %v627_v0 = vld [vmem:[#allocation10 + $0xc0] sm:$0xff] }
 0x414   : > { %v478_v1 = vsel %vm476_vm8, -inf, %v471_v61  ;;  %v479_v2 = vsel %vm477_vm9, -inf, %v472_v62  ;;  %v613_v61 = vld [vmem:[#allocation10 + $0x50] sm:$0xff]  ;;  %v628_v62 = vld [vmem:[#allocation10 + $0xc8] sm:$0xff] }
 0x415   : > { %v480_v3 = vmax.f32 %v478_v1, %v479_v2  ;;  %907 = vmatpush3.msra.mxu1 %v613_v61 }
 0x416   : > { %908 = vmatprep.subr.mxu1 %v628_v62 }
 0x417   : > { %481 = vmax.xlane.f32.xlu1 %v480_v3  ;;  %909 = vmatpush3.msra.mxu1 %v612_v63  ;;  %v610_v3 = vld [vmem:[#allocation10 + $0x38] sm:$0xff] }
 0x418   : > { %910 = vmatprep.subr.mxu1 %v627_v0 }
 0x4a0   : > { %v482_v4 = vpop.xlane.xlu1 %481 }
 0x4a1   : > { %vm483_vm10 = vcmp.ge.f32.partialorder %v478_v1, %v482_v4  ;;  %vm484_vm11 = vcmp.ge.f32.partialorder %v479_v2, %v482_v4  ;;  %v625_v4 = vld [vmem:[#allocation10 + $0xb0] sm:$0xff] }
 0x4a2   : > { %v485_v5 = vsel %vm483_vm10, -inf, %v478_v1  ;;  %v486_v6 = vsel %vm484_vm11, -inf, %v479_v2  ;;  %v611_v1 = vld [vmem:[#allocation10 + $0x40] sm:$0xff]  ;;  %v626_v2 = vld [vmem:[#allocation10 + $0xb8] sm:$0xff] }
 0x4a3   : > { %v487_v7 = vmax.f32 %v485_v5, %v486_v6  ;;  %911 = vmatpush3.msra.mxu1 %v611_v1 }
 0x4a4   : > { %912 = vmatprep.subr.mxu1 %v626_v2 }
 0x4a5   : > { %488 = vmax.xlane.f32.xlu0 %v487_v7  ;;  %913 = vmatpush3.msra.mxu1 %v610_v3  ;;  %v608_v7 = vld [vmem:[#allocation10 + $0x28] sm:$0xff] }
 0x4a6   : > { %914 = vmatprep.subr.mxu1 %v625_v4 }
 0x52e   : > { %v489_v8 = vpop.xlane.xlu0 %488 }
 0x52f   : > { %vm490_vm12 = vcmp.ge.f32.partialorder %v485_v5, %v489_v8  ;;  %vm491_vm13 = vcmp.ge.f32.partialorder %v486_v6, %v489_v8  ;;  %v623_v8 = vld [vmem:[#allocation10 + $0xa0] sm:$0xff] }
 0x530   : > { %v492_v9 = vsel %vm490_vm12, -inf, %v485_v5  ;;  %v493_v10 = vsel %vm491_vm13, -inf, %v486_v6  ;;  %v609_v5 = vld [vmem:[#allocation10 + $0x30] sm:$0xff]  ;;  %v624_v6 = vld [vmem:[#allocation10 + $0xa8] sm:$0xff] }
 0x531   : > { %v494_v11 = vmax.f32 %v492_v9, %v493_v10  ;;  %915 = vmatpush3.msra.mxu1 %v609_v5 }
 0x532   : > { %916 = vmatprep.subr.mxu1 %v624_v6 }
 0x533   : > { %495 = vmax.xlane.f32.xlu1 %v494_v11  ;;  %917 = vmatpush3.msra.mxu1 %v608_v7  ;;  %v606_v11 = vld [vmem:[#allocation10 + $0x18] sm:$0xff] }
 0x534   : > { %918 = vmatprep.subr.mxu1 %v623_v8 }
 0x5bc   : > { %v496_v12 = vpop.xlane.xlu1 %495 }
 0x5bd   : > { %vm497_vm14 = vcmp.ge.f32.partialorder %v492_v9, %v496_v12  ;;  %vm498_vm15 = vcmp.ge.f32.partialorder %v493_v10, %v496_v12  ;;  %v621_v12 = vld [vmem:[#allocation10 + $0x90] sm:$0xff] }
 0x5be   : > { %v499_v13 = vsel %vm497_vm14, -inf, %v492_v9  ;;  %v500_v14 = vsel %vm498_vm15, -inf, %v493_v10  ;;  %v607_v9 = vld [vmem:[#allocation10 + $0x20] sm:$0xff]  ;;  %v622_v10 = vld [vmem:[#allocation10 + $0x98] sm:$0xff]  ;;  %vm553_vm14 = vcmask 7168  }
 0x5bf   : > { %v501_v15 = vmax.f32 %v499_v13, %v500_v14  ;;  %919 = vmatpush3.msra.mxu1 %v607_v9 }
 0x5c0   : > { %920 = vmatprep.subr.mxu1 %v622_v10 }
 0x5c1   : > { %502 = vmax.xlane.f32.xlu0 %v501_v15  ;;  %921 = vmatpush3.msra.mxu1 %v606_v11  ;;  %v604_v15 = vld [vmem:[#allocation10 + $0x8] sm:$0xff] }
 0x5c2   : > { %922 = vmatprep.subr.mxu1 %v621_v12 }
 0x64a   : > { %v503_v16 = vpop.xlane.xlu0 %502 }
 0x64b   : > { %vm504_vm0 = vcmp.ge.f32.partialorder %v499_v13, %v503_v16  ;;  %vm505_vm1 = vcmp.ge.f32.partialorder %v500_v14, %v503_v16 }
 0x64c   : > { %v506_v17 = vsel %vm504_vm0, -inf, %v499_v13  ;;  %v507_v18 = vsel %vm505_vm1, -inf, %v500_v14  ;;  %v605_v13 = vld [vmem:[#allocation10 + $0x10] sm:$0xff]  ;;  %v620_v14 = vld [vmem:[#allocation10 + $0x88] sm:$0xff]  ;;  %vm600_vm1 = vcmp.lt.s32.totalorder %v357_v36, 256 }
 0x64d   : > { %v508_v19 = vmax.f32 %v506_v17, %v507_v18  ;;  %923 = vmatpush3.msra.mxu1 %v605_v13 }
 0x64e   : > { %924 = vmatprep.subr.mxu1 %v620_v14 }
 0x64f   : > { %509 = vmax.xlane.f32.xlu1 %v508_v19  ;;  %925 = vmatpush3.msra.mxu1 %v604_v15 }
 0x6d8   : > { %v510_v20 = vpop.xlane.xlu1 %509 }
 0x6d9   : > { %vm511_vm2 = vcmp.ge.f32.partialorder %v506_v17, %v510_v20  ;;  %vm512_vm3 = vcmp.ge.f32.partialorder %v507_v18, %v510_v20 }
 0x6da   : > { %v513_v21 = vsel %vm511_vm2, -inf, %v506_v17  ;;  %v514_v22 = vsel %vm512_vm3, -inf, %v507_v18  ;;  %v619_v17 = vld [vmem:[#allocation10 + $0x80] sm:$0xff] }
 0x6db   : > { %v515_v23 = vmax.f32 %v513_v21, %v514_v22  ;;  %926 = vmatprep.subr.mxu1 %v619_v17  ;;  %v603_v18 = vld [vmem:[#allocation10] sm:$0xff] }
 0x6dc   : > { %927 = vmatpush3.msra.mxu1 %v603_v18 }
 0x6dd   : > { %516 = vmax.xlane.f32.xlu0 %v515_v23 }
 0x766   : > { %v517_v24 = vpop.xlane.xlu0 %516 }
 0x767   : > { %vm518_vm4 = vcmp.ge.f32.partialorder %v513_v21, %v517_v24  ;;  %vm519_vm5 = vcmp.ge.f32.partialorder %v514_v22, %v517_v24 }
 0x768   : > { %v520_v25 = vsel %vm518_vm4, -inf, %v513_v21  ;;  %v521_v26 = vsel %vm519_vm5, -inf, %v514_v22  ;;  %v566_v21 = vmax.f32 %v1439_v46, 0.0  ;;  %v565_v22 = vmax.f32 %v1437_v45, 0.0 }
 0x769   : > { %v522_v27 = vmax.f32 %v520_v25, %v521_v26 }
 0x76b   : > { %523 = vmax.xlane.f32.xlu1 %v522_v27 }
 0x7f4   : > { %v524_v28 = vpop.xlane.xlu1 %523 }
 0x7f5   : > { %vm525_vm6 = vcmp.ge.f32.partialorder %v520_v25, %v524_v28  ;;  %vm526_vm7 = vcmp.ge.f32.partialorder %v521_v26, %v524_v28 }
 0x7f6   : > { %v527_v29 = vsel %vm525_vm6, -inf, %v520_v25  ;;  %v528_v30 = vsel %vm526_vm7, -inf, %v521_v26 }
 0x7f7   : > { %v529_v32 = vmax.f32 %v527_v29, %v528_v30 }
 0x7f9   : > { %530 = vmax.xlane.f32.xlu0 %v529_v32 }
 0x882   : > { %v531_v33 = vpop.xlane.xlu0 %530 }
 0x883   : > { %vm532_vm8 = vcmp.ge.f32.partialorder %v527_v29, %v531_v33  ;;  %vm533_vm9 = vcmp.ge.f32.partialorder %v528_v30, %v531_v33 }
 0x884   : > { %v534_v34 = vsel %vm532_vm8, -inf, %v527_v29  ;;  %v535_v35 = vsel %vm533_vm9, -inf, %v528_v30  ;;  %v1241_v29 = vmov 1966171168  }
 0x885   : > { %v536_v38 = vmax.f32 %v534_v34, %v535_v35  ;;  %v585_v30 = vunpack.c.l.s4 %v1241_v29 }
 0x887   : > { %537 = vmax.xlane.f32.xlu1 %v536_v38 }
 0x910   : > { %v538_v39 = vpop.xlane.xlu1 %537 }
 0x911   : > { %vm539_vm10 = vcmp.ge.f32.partialorder %v534_v34, %v538_v39  ;;  %vm540_vm11 = vcmp.ge.f32.partialorder %v535_v35, %v538_v39 }
 0x912   : > { %v541_v40 = vsel %vm539_vm10, -inf, %v534_v34  ;;  %v542_v41 = vsel %vm540_vm11, -inf, %v535_v35  ;;  %v586_v35 = vunpack.c.0.s8 %v585_v30 }
 0x913   : > { %v543_v42 = vmax.f32 %v541_v40, %v542_v41 }
 0x915   : > { %544 = vmax.xlane.f32.xlu0 %v543_v42 }
 0x99e   : > { %v545_v43 = vpop.xlane.xlu0 %544 }
 0x99f   : > { %vm546_vm12 = vcmp.ge.f32.partialorder %v541_v40, %v545_v43  ;;  %vm547_vm13 = vcmp.ge.f32.partialorder %v542_v41, %v545_v43 }
 0x9a0   : > { %v548_v44 = vsel %vm546_vm12, -inf, %v541_v40  ;;  %v549_v47 = vsel %vm547_vm13, -inf, %v542_v41  ;;  %v589_v41 = vsub.s32 %v586_v35, %v1430_v37 }
 0x9a1   : > { %v550_v48 = vmax.f32 %v548_v44, %v549_v47 }
 0x9a3   : > { %551 = vmax.xlane.f32.xlu1 %v550_v48 }
 0xa2c   : > { %v552_v16 = vpop.xlane.xlu1 %551 }
 0xa2d   : > { %554 = vst.msk [vmem:[#allocation3] sm:$0xff] %vm553_vm14, %v552_v16 }
 0xa34   : > { %v557_v19 = vld [vmem:[#allocation3] sm:$0xff] }
 0xa35   : > { %560 = vperm.xlu0 %1020, %v557_v19  }
 0xab0   : > { %v561_v20 = vpop.permute.xlu0 %560 }
 0xab1   : > { %vm563_vm15 = vcmp.ge.f32.partialorder %v1437_v45, %v561_v20  ;;  %vm564_vm0 = vcmp.ge.f32.partialorder %v1439_v46, %v561_v20 }
 0xab2   : > { %v569_v23 = vsel %vm563_vm15, 1, %v1240_v49  ;;  %v570_v24 = vsel %vm564_vm0, 1, %v1240_v49  ;;  %886 = vmatprep.mubr.msk.f32.mxu1 %vm564_vm0, %v566_v21 }
 0xab3   : > { %v571_v25 = vrot.slane %v569_v23, 4  ;;  %v577_v26 = vrot.slane %v570_v24, 4  ;;  %887 = vmatmul.mubr.msk.f32.vlgmr.msra.gmra.mxu1 %vm563_vm15, %v565_v22 }
 0xab5   : > { %v572_v27 = vadd.s32 %v571_v25, %v569_v23  ;;  %v578_v28 = vadd.s32 %v577_v26, %v570_v24 }
 0xab7   : > { %v573_v32 = vrot.slane %v572_v27, 2  ;;  %v579_v33 = vrot.slane %v578_v28, 2 }
 0xab9   : > { %v574_v34 = vadd.s32 %v573_v32, %v572_v27  ;;  %v580_v46 = vadd.s32 %v579_v33, %v578_v28 }
 0xabb   : > { %v575_v45 = vrot.slane %v574_v34, 1  ;;  %v581_v38 = vrot.slane %v580_v46, 1 }
 0xabd   : > { %v576_v39 = vadd.s32 %v575_v45, %v574_v34  ;;  %v582_v40 = vadd.s32 %v581_v38, %v580_v46 }
 0xabf   : > { %v583_v42 = vcombine.low %v576_v39, %v582_v40 }
 0xac1   : > { %v590_v43 = vrot.slane %v583_v42, %v589_v41 }
 0xac3   : > { %v597_v44 = vrot.slane %v590_v43, %v589_v41 }
 0xac5   : > { %602 = vst.msk [vmem:[%s319_s30] sm:$0x3] %vm600_vm1, %v597_v44 }
 0xac6   : > { %1140 = shalt.err (!%p1137_p3)
}
 0xac7   : > { %s1141_s27 = scalar_lea.hbm %s738_s12, 32  ;;  %s1145_s30 = scalar_lea.hbm %s1518_s6, 64 }
 0xac8   : > { %p1142_p5 = scmp.ne.s32.totalorder %s738_s12, %s1141_s27  ;;  %p1146_p2 = scmp.lt.s32.totalorder %s738_s12, %s1518_s6 }
 0xac9   : > { %p1147_p4 = scmp.lt.s32.totalorder %s1145_s30, %s1141_s27 }
 0xaca   : > { %p1143_p9 = pnand %p1142_p5, %p1538_p12 }
 0xacb   : > { %p1148_p6 = por %p1147_p4, %p1146_p2 }
 0xacc   : > { %p1144_p11 = pneg %p1143_p9 }
 0xace   : > { %p1149_p8 = pnand %p1148_p6, %p1144_p11 }
 0xad0   : > { %1152 = shalt.err (!%p1149_p8)
}
 0xad1   : > { %946 = dma.vmem_to_hbm [thread:$0]  (%p1538_p12), %s741_s8, 32, %s738_s12, %s713_s19  }
 0xad2   : > { %s890_s18 = sshll.u32 %s1300_s25, 7  ;;  %s312_s10 = scalar_lea.vmem [#allocation12], %s880_s13 }
 0xad3   : > { %s726_s26 = sshll.u32 %s312_s10, 4  ;;  %s724_s27 = scalar_lea.hbm %s1517_s5, %s890_s18  ;;  %s727_s26 = int_to_ptr.vmem [resolvable:$true] %s726_s26 }
 0xad4   : > { %s708_s29 = scalar_lea.sflag [#allocation6], %s1405_s9  ;;  %s1153_s20 = scalar_lea.vmem %s727_s26, 128 }
 0xad5   : > { %p1154_p7 = scmp.ne.s32.totalorder %s727_s26, %s1153_s20  ;;  %s1243_s8 = smov [#allocation12]  }
 0xad6   : > { %s1157_s25 = sshll.u32 %s1243_s8, 4  ;;  %s1158_s25 = int_to_ptr.vmem [resolvable:$false] %s1157_s25 }
 0xad7   : > { %p1155_p10 = pnand %p1154_p7, %p1538_p12  ;;  %s1159_s13 = scalar_lea.vmem %s1158_s25, 256 }
 0xad8   : > { %p1160_p0 = scmp.lt.s32.totalorder %s727_s26, %s1158_s25  ;;  %p1161_p1 = scmp.lt.s32.totalorder %s1159_s13, %s1153_s20 }
 0xad9   : > { %p1156_p13 = pneg %p1155_p10 }
 0xada   : > { %p1162_p3 = por %p1161_p1, %p1160_p0 }
 0xadc   : > { %p1163_p5 = pnand %p1162_p3, %p1156_p13 }
 0xb73   : > { %v928_v36 = vpop.f32.mrf.mxu1 }
 0xb75   : > { %v929_v37 = vpop.f32.mrf.mxu1 }
 0xb76   : > { %v930_v47 = vadd.f32 %v929_v37, %v928_v36 }
 0xb78   : > { %v703_v48 = vadd.f32 %v930_v47, %v1426_v31 }
 0xb7a   : > { %706 = vst [vmem:[%s312_s10] sm:$0xff] %v703_v48 }
 0xb7b   : > { %1166 = shalt.err (!%p1163_p5)
}
 0xb7c   : > { %s1167_s12 = scalar_lea.hbm %s724_s27, 128  ;;  %s1171_s30 = scalar_lea.hbm %s1517_s5, 256 }
 0xb7d   : > { %p1168_p9 = scmp.ne.s32.totalorder %s724_s27, %s1167_s12  ;;  %p1172_p4 = scmp.lt.s32.totalorder %s724_s27, %s1517_s5 }
 0xb7e   : > { %p1173_p6 = scmp.lt.s32.totalorder %s1171_s30, %s1167_s12 }
 0xb7f   : > { %p1169_p11 = pnand %p1168_p9, %p1538_p12 }
 0xb80   : > { %p1174_p8 = por %p1173_p6, %p1172_p4 }
 0xb81   : > { %p1170_p2 = pneg %p1169_p11 }
 0xb83   : > { %p1175_p7 = pnand %p1174_p8, %p1170_p2 }
 0xb85   : > { %1178 = shalt.err (!%p1175_p7)
}
 0xb86   : > { %945 = dma.vmem_to_hbm [thread:$0]  (%p1538_p12), %s727_s26, 128, %s724_s27, %s708_s29  }
 0xb87 PF: > { %s752_s18 = sand.u32 1, %s1217_s21   ;;  %p1539_p10 = scmp.ne.s32.totalorder %s1525_s28, 0 }
 0xb88   : > { %p1540_p13 = scmp.ge.s32.totalorder %s1229_s24, 2  ;;  %s753_s10 = scalar_lea.sflag [#allocation6], %s752_s18 }
 0xb8a   : > { %p964_p0 = pnand %p1540_p13, %p1539_p10 }
 0xb8c   : > { %p965_p1 = pneg %p964_p0 }
 0xb8e   : > { %1208 = dma.done.wait (%p965_p1), %s753_s10, 128  }
 0xb8f   : > { %1210 = vsyncadd (%p965_p1), %s753_s10, 4294967168  ;;  %s762_s14 = scalar_lea.sflag [#allocation14], %s752_s18 }
 0xb90   : > { %1212 = dma.done.wait (%p965_p1), %s762_s14, 32  }
 0xb91   : > { %1214 = vsyncadd (%p965_p1), %s762_s14, 4294967264  ;;  %p25_p12 = scmp.ge.s32.totalorder %s1359_s11, 4   ;;  %s1541_s21 = smov %s1221_s22 }
 0xb92   : > { %s1542_s22 = smov %s1225_s23  ;;  %s1543_s23 = smov %s1369_s15 }
 0xb93   : > { %s1544_s24 = smov %s1359_s11  ;;  %27 = sbr.rel (!%p25_p12) target bundleno = 11 (0xb), region = 115 }
 0xb98   :  { %767 = vsyncpa [#allocation5], 1 }
 0xb99   :  { %769 = vsyncpa [#allocation5 + $0x1], 1 }
 0xb9a   :  { %770 = vsyncpa [#allocation8], 1 }
 0xb9b   :  { %771 = vsyncpa [#allocation11], 1 }
 0xb9c   :  { %772 = vsyncpa [#allocation6], 1 }
 0xb9d   :  { %774 = vsyncpa [#allocation6 + $0x1], 1 }
 0xb9e   :  { %775 = vsyncpa [#allocation14], 1 }
 0xb9f   :  { %777 = vsyncpa [#allocation14 + $0x1], 1 }

</bundles_post_ra>
